<compile_context>
chip_gen: v7x
topology: tpu7x:2x2x1
jax: 0.10.0
libtpu: 0.0.40
codegen_flags: <defaults>
</compile_context>

<pallas_src>
import functools

import jax
import jax.numpy as jnp
import numpy as np
from jax.experimental import pallas as pl
from jax.experimental.pallas import tpu as pltpu

# ----------------------------- model config ---------------------------------
NTOKEN = 64
NINP = 32
NHID = 32
NLAYERS = 2                               # kernel is specialised to a 2-layer wavefront
BATCH = 2
SEQ = 8
BPAD = 8                                  # batch rows padded to one sublane group
NPAD = ((NTOKEN + 127) // 128) * 128      # decoder output padded to 128 lanes


def _slab_offsets(ntoken, nhid):
    """Row offsets of the packed (X, 128) weight slab (all multiples of 8)."""
    o_gx0 = 0                      # (ntoken, 4H) fused embedding+W_ih0 table
    o_whh0 = o_gx0 + ntoken        # (H, 4H)      W_hh0^T
    o_w1 = o_whh0 + nhid           # (2H, 4H)     [W_ih1 ; W_hh1]^T
    o_b1 = o_w1 + 2 * nhid         # (8, 4H)      b1 in row 0 (8-row padded)
    o_dec = o_b1 + 8               # (H, NPAD)    decoder^T, zero padded
    total = o_dec + nhid
    return o_gx0, o_whh0, o_w1, o_b1, o_dec, total


# --------------------------- fused forward kernel ----------------------------
def _fused_rnn_kernel(ids_ref, wslab_ref, hc0_ref, out_ref, x1_buf, *,
                      seq, bpad, nhid, ntoken):
    """Single-invocation kernel (no grid). Everything lives in VMEM.

      ids_ref   : (T*BPAD, 1) int32, time-major rows (row n = t*BPAD + b)
      wslab_ref : (200, 128) f32 packed weights (see _slab_offsets)
      hc0_ref   : (4*BPAD, H) f32 initial state rows [h_l0, c_l0, h_l1, c_l1]
      out_ref   : (T*BPAD, NPAD) decoded logits (time-major, lane-dense)
      x1_buf    : (T*BPAD, H) VMEM scratch holding layer-1 outputs
    """
    H = nhid
    n = seq * bpad
    o_gx0, o_whh0, o_w1, o_b1, o_dec, _ = _slab_offsets(ntoken, nhid)

    # Hoisted weight loads (static, 8-aligned slices of the single slab).
    whh0_t = wslab_ref[o_whh0:o_whh0 + H, :]                    # (H, 4H)
    w1_cat = wslab_ref[o_w1:o_w1 + 2 * H, :]                    # (2H, 4H)
    bias1 = jnp.broadcast_to(wslab_ref[o_b1:o_b1 + 1, :], (bpad, 4 * H))
    dec_t = wslab_ref[o_dec:o_dec + H, :]                       # (H, NPAD)

    # --- fused embedding gather + layer-0 input projection + bias:
    #     one one-hot MXU matmul against the precomputed table.
    ids = ids_ref[...]                                          # (n, 1) i32
    tok_iota = jax.lax.broadcasted_iota(jnp.int32, (n, ntoken), 1)
    onehot = (ids == tok_iota).astype(jnp.float32)              # (n, ntoken)
    gx0 = jnp.dot(onehot, wslab_ref[o_gx0:o_gx0 + ntoken, :],
                  preferred_element_type=jnp.float32)           # (n, 4H)

    # --- initial state (PyTorch gate order i, f, g, o; g pre-act pre-scaled x2)
    h0 = hc0_ref[0 * bpad:1 * bpad, :]
    c0 = hc0_ref[1 * bpad:2 * bpad, :]
    h1 = hc0_ref[2 * bpad:3 * bpad, :]
    c1 = hc0_ref[3 * bpad:4 * bpad, :]

    def lstm_gates(gates, c_prev):
        # One full-tile sigmoid; tanh(x) recovered as 2*sigmoid(2x) - 1 because
        # the g-gate pre-activation was scaled by 2 in the wrapper.
        sg = jax.nn.sigmoid(gates)
        i_g = sg[:, 0 * H:1 * H]
        f_g = sg[:, 1 * H:2 * H]
        g_g = 2.0 * sg[:, 2 * H:3 * H] - 1.0
        o_g = sg[:, 3 * H:4 * H]
        c_new = f_g * c_prev + i_g * g_g
        h_new = o_g * jnp.tanh(c_new)
        return h_new, c_new

    # --- wavefront over both layers; statically unrolled time loop.
    for t in range(seq):
        # layer 0: hoisted input projection + recurrent matmul
        gates0 = gx0[t * bpad:(t + 1) * bpad, :] + jnp.dot(
            h0, whh0_t, preferred_element_type=jnp.float32)     # (bpad, 4H)
        h0, c0 = lstm_gates(gates0, c0)

        # layer 1: one fused [x_t ; h1] @ [[W_ih1],[W_hh1]] matmul
        xin = jnp.concatenate([h0, h1], axis=1)                 # (bpad, 2H)
        gates1 = jnp.dot(xin, w1_cat,
                         preferred_element_type=jnp.float32) + bias1
        h1, c1 = lstm_gates(gates1, c1)

        # sublane-aligned store of this step's layer-1 output
        x1_buf[t * bpad:(t + 1) * bpad, :] = h1

    # --- decoder: single lane-dense (n, 128) matmul + unmasked full-tile store
    out_ref[...] = jnp.dot(x1_buf[...], dec_t,
                           preferred_element_type=jnp.float32)


# ------------------------------ model forward --------------------------------
@jax.jit
def rnn_model_forward(kparams, input_ids, target_ids, hidden):
    """Mirror of RNNModel.forward with self.prob is None."""
    del target_ids  # only used in the sampled-softmax branch (not implemented)
    B, T = input_ids.shape
    assert B <= BPAD
    h0_all, c0_all = hidden                       # each (NLAYERS, B, NHID)

    # time-major flat ids padded to BPAD rows per step: row n = t*BPAD + b
    ids_tm = jnp.zeros((T, BPAD), jnp.int32).at[:, :B].set(
        jnp.transpose(input_ids, (1, 0)).astype(jnp.int32)).reshape(T * BPAD, 1)

    # packed initial state, BPAD-padded: rows [h_l0, c_l0, h_l1, c_l1]
    hc0 = jnp.zeros((4, BPAD, NHID), jnp.float32)
    hc0 = hc0.at[0, :B].set(h0_all[0]).at[1, :B].set(c0_all[0])
    hc0 = hc0.at[2, :B].set(h0_all[1]).at[3, :B].set(c0_all[1])
    hc0 = hc0.reshape(4 * BPAD, NHID)

    kernel = functools.partial(_fused_rnn_kernel, seq=T, bpad=BPAD,
                               nhid=NHID, ntoken=NTOKEN)
    vmem = pl.BlockSpec(memory_space=pltpu.MemorySpace.VMEM)
    out = pl.pallas_call(
        kernel,
        out_shape=jax.ShapeDtypeStruct((T * BPAD, NPAD), jnp.float32),
        in_specs=[vmem, vmem, vmem],
        out_specs=vmem,
        scratch_shapes=[pltpu.VMEM((T * BPAD, NHID), jnp.float32)],
    )(ids_tm, kparams["wslab"], hc0)

    # (T*BPAD, NPAD) time-major -> (B, T, ntoken); tiny wrapper-side reshuffle.
    decoded = jnp.transpose(out.reshape(T, BPAD, NPAD), (1, 0, 2))[:B, :, :NTOKEN]
    return decoded, None, None


# ------------------------------ parameter init --------------------------------
def init_params(key):
    initrange = 0.1
    keys = jax.random.split(key, 2 + 4 * NLAYERS)
    enc = jax.random.uniform(keys[0], (NTOKEN, NINP), jnp.float32,
                             -initrange, initrange)
    enc = enc.at[0].set(0.0)                     # padding_idx=0
    dec = jax.random.uniform(keys[1], (NTOKEN, NHID), jnp.float32,
                             -initrange, initrange)
    dec = dec.at[0].set(0.0)

    k = 1.0 / np.sqrt(NHID)                      # PyTorch LSTM default init
    w_ih, w_hh, bias = [], [], []
    for l in range(NLAYERS):
        d_in = NINP if l == 0 else NHID
        kk = keys[2 + 4 * l: 2 + 4 * (l + 1)]
        w_ih.append(jax.random.uniform(kk[0], (4 * NHID, d_in), jnp.float32, -k, k))
        w_hh.append(jax.random.uniform(kk[1], (4 * NHID, NHID), jnp.float32, -k, k))
        b_ih = jax.random.uniform(kk[2], (4 * NHID,), jnp.float32, -k, k)
        b_hh = jax.random.uniform(kk[3], (4 * NHID,), jnp.float32, -k, k)
        bias.append((b_ih + b_hh).reshape(1, 4 * NHID))
    return {"encoder": enc, "decoder": dec,
            "w_ih": w_ih, "w_hh": w_hh, "bias": bias}


def prepare_kernel_params(params):
    """One-time layout prep: fused embedding/projection table, g-gate x2
    pre-scaling (tanh(x) = 2*sigmoid(2x) - 1), all weights packed into one
    lane-dense (X, 128) f32 slab."""
    H = NHID

    def gscale_rows(w):   # (4H, D): scale the g-gate rows by 2
        return w.at[2 * H:3 * H, :].multiply(2.0)

    def gscale_vec(b):    # (4H,)
        return b.at[2 * H:3 * H].multiply(2.0)

    w_ih0 = gscale_rows(params["w_ih"][0])
    w_hh0 = gscale_rows(params["w_hh"][0])
    b0 = gscale_vec(params["bias"][0].reshape(-1))
    w_ih1 = gscale_rows(params["w_ih"][1])
    w_hh1 = gscale_rows(params["w_hh"][1])
    b1 = gscale_vec(params["bias"][1].reshape(-1))

    # fused embedding + layer-0 input projection + bias (exact for one-hot rows)
    gx0_table = params["encoder"] @ w_ih0.T + b0[None, :]       # (NTOKEN, 4H)
    whh0_t = w_hh0.T                                            # (H, 4H)
    w1_cat = jnp.concatenate([w_ih1.T, w_hh1.T], axis=0)        # (2H, 4H)
    bias1_blk = jnp.zeros((8, 4 * H), jnp.float32).at[0].set(b1)
    dec_t_pad = jnp.zeros((H, NPAD), jnp.float32).at[:, :NTOKEN].set(
        params["decoder"].T)                                    # (H, NPAD)

    o_gx0, o_whh0, o_w1, o_b1, o_dec, total = _slab_offsets(NTOKEN, NHID)
    wslab = jnp.concatenate(
        [gx0_table, whh0_t, w1_cat, bias1_blk, dec_t_pad], axis=0)
    assert wslab.shape == (total, NPAD)
    return {"wslab": wslab}


# -------------------------- pure-JAX reference (check) ------------------------
def rnn_model_forward_ref(params, input_ids, target_ids, hidden):
    del target_ids
    emb = params["encoder"][input_ids]           # (B, T, ninp)
    h_all, c_all = hidden
    x = emb
    for l in range(NLAYERS):
        h, c = h_all[l], c_all[l]
        outs = []
        for t in range(x.shape[1]):
            gates = (x[:, t] @ params["w_ih"][l].T
                     + h @ params["w_hh"][l].T + params["bias"][l][0])
            i = jax.nn.sigmoid(gates[:, :NHID])
            f = jax.nn.sigmoid(gates[:, NHID:2 * NHID])
            g = jnp.tanh(gates[:, 2 * NHID:3 * NHID])
            o = jax.nn.sigmoid(gates[:, 3 * NHID:4 * NHID])
            c = f * c + i * g
            h = o * jnp.tanh(c)
            outs.append(h)
        x = jnp.stack(outs, axis=1)
    return x @ params["decoder"].T               # (B, T, ntoken)


# ------------------------------------ main ------------------------------------
if __name__ == "__main__":
    key = jax.random.PRNGKey(0)
    kp, ki, kt = jax.random.split(key, 3)

    params = init_params(kp)
    kparams = prepare_kernel_params(params)
    input_ids = jax.random.randint(ki, (BATCH, SEQ), 0, NTOKEN, dtype=jnp.int32)
    target_ids = jax.random.randint(kt, (BATCH, SEQ), 0, NTOKEN, dtype=jnp.int32)
    hidden = (jnp.zeros((NLAYERS, BATCH, NHID), jnp.float32),   # init_hidden
              jnp.zeros((NLAYERS, BATCH, NHID), jnp.float32))

    decoded, sp, sn = rnn_model_forward(kparams, input_ids, target_ids, hidden)
    decoded = jax.block_until_ready(decoded)
    assert decoded.shape == (BATCH, SEQ, NTOKEN)
    assert sp is None and sn is None

    ref = jax.block_until_ready(
        rnn_model_forward_ref(params, input_ids, target_ids, hidden))
    # tolerance loosened slightly vs v1: the kernel recovers tanh(x) via the
    # exact identity 2*sigmoid(2x)-1, which differs from XLA's tanh by a few ulp.
    np.testing.assert_allclose(np.asarray(decoded), np.asarray(ref),
                               rtol=1e-3, atol=1e-4)
    print("KERNEL_OK")
</pallas_src>

<mosaic_0001>
module attributes {stable_mosaic.version = 11 : i64} {
  func.func @_fused_rnn_kernel(%arg0: memref<64x1xi32, #tpu.memory_space<vmem>>, %arg1: memref<200x128xf32, #tpu.memory_space<vmem>>, %arg2: memref<32x32xf32, #tpu.memory_space<vmem>>, %arg3: memref<64x128xf32, #tpu.memory_space<vmem>>, %arg4: memref<64x32xf32, #tpu.memory_space<vmem>>) attributes {dimension_semantics = [], scalar_prefetch = 0 : i64, scratch_operands = 1 : i64, tpu.core_type = #tpu.core_type<tc>} {
    %c64 = arith.constant 64 : index
    %c0 = arith.constant 0 : index
    %0 = vector.load %arg1[%c64, %c0] : memref<200x128xf32, #tpu.memory_space<vmem>>, vector<32x128xf32>
    %c96 = arith.constant 96 : index
    %c0_0 = arith.constant 0 : index
    %1 = vector.load %arg1[%c96, %c0_0] : memref<200x128xf32, #tpu.memory_space<vmem>>, vector<64x128xf32>
    %c160 = arith.constant 160 : index
    %c0_1 = arith.constant 0 : index
    %2 = vector.load %arg1[%c160, %c0_1] : memref<200x128xf32, #tpu.memory_space<vmem>>, vector<1x128xf32>
    %3 = vector.shape_cast %2 : vector<1x128xf32> to vector<1x128xf32>
    %4 = vector.broadcast %3 : vector<1x128xf32> to vector<8x128xf32>
    %c168 = arith.constant 168 : index
    %c0_2 = arith.constant 0 : index
    %5 = vector.load %arg1[%c168, %c0_2] : memref<200x128xf32, #tpu.memory_space<vmem>>, vector<32x128xf32>
    %c0_3 = arith.constant 0 : index
    %c0_4 = arith.constant 0 : index
    %6 = vector.load %arg0[%c0_3, %c0_4] : memref<64x1xi32, #tpu.memory_space<vmem>>, vector<64x1xi32>
    %7 = tpu.iota {dimensions = array<i32: 1>} : vector<64x64xi32>
    %8 = vector.broadcast %6 : vector<64x1xi32> to vector<64x64xi32>
    %9 = arith.cmpi eq, %8, %7 : vector<64x64xi32>
    %10 = arith.extui %9 : vector<64x64xi1> to vector<64x64xi32>
    %11 = arith.sitofp %10 : vector<64x64xi32> to vector<64x64xf32>
    %c0_5 = arith.constant 0 : index
    %c0_6 = arith.constant 0 : index
    %12 = vector.load %arg1[%c0_5, %c0_6] : memref<200x128xf32, #tpu.memory_space<vmem>>, vector<64x128xf32>
    %cst = arith.constant dense<0.000000e+00> : vector<64x128xf32>
    %13 = tpu.matmul %11, %12, %cst {dimension_numbers = #tpu.dot_dimension_numbers<[1], [0], [0], [1], [0, 0, 1, 1], [], []>} : vector<64x64xf32>, vector<64x128xf32>, vector<64x128xf32> -> vector<64x128xf32>
    %c0_7 = arith.constant 0 : index
    %c0_8 = arith.constant 0 : index
    %14 = vector.load %arg2[%c0_7, %c0_8] : memref<32x32xf32, #tpu.memory_space<vmem>>, vector<8x32xf32>
    %c8 = arith.constant 8 : index
    %c0_9 = arith.constant 0 : index
    %15 = vector.load %arg2[%c8, %c0_9] : memref<32x32xf32, #tpu.memory_space<vmem>>, vector<8x32xf32>
    %c16 = arith.constant 16 : index
    %c0_10 = arith.constant 0 : index
    %16 = vector.load %arg2[%c16, %c0_10] : memref<32x32xf32, #tpu.memory_space<vmem>>, vector<8x32xf32>
    %c24 = arith.constant 24 : index
    %c0_11 = arith.constant 0 : index
    %17 = vector.load %arg2[%c24, %c0_11] : memref<32x32xf32, #tpu.memory_space<vmem>>, vector<8x32xf32>
    %18 = vector.extract_strided_slice %13 {offsets = [0, 0], sizes = [8, 128], strides = [1, 1]} : vector<64x128xf32> to vector<8x128xf32>
    %cst_12 = arith.constant dense<0.000000e+00> : vector<8x128xf32>
    %19 = tpu.matmul %14, %0, %cst_12 {dimension_numbers = #tpu.dot_dimension_numbers<[1], [0], [0], [1], [0, 0, 1, 1], [], []>} : vector<8x32xf32>, vector<32x128xf32>, vector<8x128xf32> -> vector<8x128xf32>
    %20 = arith.addf %18, %19 : vector<8x128xf32>
    %21 = arith.negf %20 : vector<8x128xf32>
    %22 = math.exp %21 : vector<8x128xf32>
    %cst_13 = arith.constant 1.000000e+00 : f32
    %23 = vector.broadcast %cst_13 : f32 to vector<8x128xf32>
    %24 = arith.addf %23, %22 : vector<8x128xf32>
    %25 = arith.divf %23, %24 : vector<8x128xf32>
    %26 = vector.extract_strided_slice %25 {offsets = [0, 0], sizes = [8, 32], strides = [1, 1]} : vector<8x128xf32> to vector<8x32xf32>
    %27 = vector.extract_strided_slice %25 {offsets = [0, 32], sizes = [8, 32], strides = [1, 1]} : vector<8x128xf32> to vector<8x32xf32>
    %28 = vector.extract_strided_slice %25 {offsets = [0, 64], sizes = [8, 32], strides = [1, 1]} : vector<8x128xf32> to vector<8x32xf32>
    %cst_14 = arith.constant 2.000000e+00 : f32
    %29 = vector.broadcast %cst_14 : f32 to vector<8x32xf32>
    %30 = arith.mulf %29, %28 : vector<8x32xf32>
    %cst_15 = arith.constant 1.000000e+00 : f32
    %31 = vector.broadcast %cst_15 : f32 to vector<8x32xf32>
    %32 = arith.subf %30, %31 : vector<8x32xf32>
    %33 = vector.extract_strided_slice %25 {offsets = [0, 96], sizes = [8, 32], strides = [1, 1]} : vector<8x128xf32> to vector<8x32xf32>
    %34 = arith.mulf %27, %15 : vector<8x32xf32>
    %35 = arith.mulf %26, %32 : vector<8x32xf32>
    %36 = arith.addf %34, %35 : vector<8x32xf32>
    %37 = math.tanh %36 : vector<8x32xf32>
    %38 = arith.mulf %33, %37 : vector<8x32xf32>
    %39 = tpu.concatenate %38, %16 in 1 : vector<8x32xf32>, vector<8x32xf32> -> vector<8x64xf32>
    %cst_16 = arith.constant dense<0.000000e+00> : vector<8x128xf32>
    %40 = tpu.matmul %39, %1, %cst_16 {dimension_numbers = #tpu.dot_dimension_numbers<[1], [0], [0], [1], [0, 0, 1, 1], [], []>} : vector<8x64xf32>, vector<64x128xf32>, vector<8x128xf32> -> vector<8x128xf32>
    %41 = arith.addf %40, %4 : vector<8x128xf32>
    %42 = arith.negf %41 : vector<8x128xf32>
    %43 = math.exp %42 : vector<8x128xf32>
    %cst_17 = arith.constant 1.000000e+00 : f32
    %44 = vector.broadcast %cst_17 : f32 to vector<8x128xf32>
    %45 = arith.addf %44, %43 : vector<8x128xf32>
    %46 = arith.divf %44, %45 : vector<8x128xf32>
    %47 = vector.extract_strided_slice %46 {offsets = [0, 0], sizes = [8, 32], strides = [1, 1]} : vector<8x128xf32> to vector<8x32xf32>
    %48 = vector.extract_strided_slice %46 {offsets = [0, 32], sizes = [8, 32], strides = [1, 1]} : vector<8x128xf32> to vector<8x32xf32>
    %49 = vector.extract_strided_slice %46 {offsets = [0, 64], sizes = [8, 32], strides = [1, 1]} : vector<8x128xf32> to vector<8x32xf32>
    %cst_18 = arith.constant 2.000000e+00 : f32
    %50 = vector.broadcast %cst_18 : f32 to vector<8x32xf32>
    %51 = arith.mulf %50, %49 : vector<8x32xf32>
    %cst_19 = arith.constant 1.000000e+00 : f32
    %52 = vector.broadcast %cst_19 : f32 to vector<8x32xf32>
    %53 = arith.subf %51, %52 : vector<8x32xf32>
    %54 = vector.extract_strided_slice %46 {offsets = [0, 96], sizes = [8, 32], strides = [1, 1]} : vector<8x128xf32> to vector<8x32xf32>
    %55 = arith.mulf %48, %17 : vector<8x32xf32>
    %56 = arith.mulf %47, %53 : vector<8x32xf32>
    %57 = arith.addf %55, %56 : vector<8x32xf32>
    %58 = math.tanh %57 : vector<8x32xf32>
    %59 = arith.mulf %54, %58 : vector<8x32xf32>
    %c0_20 = arith.constant 0 : index
    %c0_21 = arith.constant 0 : index
    %60 = vector.load %arg4[%c0_20, %c0_21] : memref<64x32xf32, #tpu.memory_space<vmem>>, vector<8x32xf32>
    tpu.vector_store %arg4[%c0_20, %c0_21], %59 {strides = array<i32>} : memref<64x32xf32, #tpu.memory_space<vmem>>, vector<8x32xf32>,
    %61 = vector.extract_strided_slice %13 {offsets = [8, 0], sizes = [8, 128], strides = [1, 1]} : vector<64x128xf32> to vector<8x128xf32>
    %cst_22 = arith.constant dense<0.000000e+00> : vector<8x128xf32>
    %62 = tpu.matmul %38, %0, %cst_22 {dimension_numbers = #tpu.dot_dimension_numbers<[1], [0], [0], [1], [0, 0, 1, 1], [], []>} : vector<8x32xf32>, vector<32x128xf32>, vector<8x128xf32> -> vector<8x128xf32>
    %63 = arith.addf %61, %62 : vector<8x128xf32>
    %64 = arith.negf %63 : vector<8x128xf32>
    %65 = math.exp %64 : vector<8x128xf32>
    %cst_23 = arith.constant 1.000000e+00 : f32
    %66 = vector.broadcast %cst_23 : f32 to vector<8x128xf32>
    %67 = arith.addf %66, %65 : vector<8x128xf32>
    %68 = arith.divf %66, %67 : vector<8x128xf32>
    %69 = vector.extract_strided_slice %68 {offsets = [0, 0], sizes = [8, 32], strides = [1, 1]} : vector<8x128xf32> to vector<8x32xf32>
    %70 = vector.extract_strided_slice %68 {offsets = [0, 32], sizes = [8, 32], strides = [1, 1]} : vector<8x128xf32> to vector<8x32xf32>
    %71 = vector.extract_strided_slice %68 {offsets = [0, 64], sizes = [8, 32], strides = [1, 1]} : vector<8x128xf32> to vector<8x32xf32>
    %cst_24 = arith.constant 2.000000e+00 : f32
    %72 = vector.broadcast %cst_24 : f32 to vector<8x32xf32>
    %73 = arith.mulf %72, %71 : vector<8x32xf32>
    %cst_25 = arith.constant 1.000000e+00 : f32
    %74 = vector.broadcast %cst_25 : f32 to vector<8x32xf32>
    %75 = arith.subf %73, %74 : vector<8x32xf32>
    %76 = vector.extract_strided_slice %68 {offsets = [0, 96], sizes = [8, 32], strides = [1, 1]} : vector<8x128xf32> to vector<8x32xf32>
    %77 = arith.mulf %70, %36 : vector<8x32xf32>
    %78 = arith.mulf %69, %75 : vector<8x32xf32>
    %79 = arith.addf %77, %78 : vector<8x32xf32>
    %80 = math.tanh %79 : vector<8x32xf32>
    %81 = arith.mulf %76, %80 : vector<8x32xf32>
    %82 = tpu.concatenate %81, %59 in 1 : vector<8x32xf32>, vector<8x32xf32> -> vector<8x64xf32>
    %cst_26 = arith.constant dense<0.000000e+00> : vector<8x128xf32>
    %83 = tpu.matmul %82, %1, %cst_26 {dimension_numbers = #tpu.dot_dimension_numbers<[1], [0], [0], [1], [0, 0, 1, 1], [], []>} : vector<8x64xf32>, vector<64x128xf32>, vector<8x128xf32> -> vector<8x128xf32>
    %84 = arith.addf %83, %4 : vector<8x128xf32>
    %85 = arith.negf %84 : vector<8x128xf32>
    %86 = math.exp %85 : vector<8x128xf32>
    %cst_27 = arith.constant 1.000000e+00 : f32
    %87 = vector.broadcast %cst_27 : f32 to vector<8x128xf32>
    %88 = arith.addf %87, %86 : vector<8x128xf32>
    %89 = arith.divf %87, %88 : vector<8x128xf32>
    %90 = vector.extract_strided_slice %89 {offsets = [0, 0], sizes = [8, 32], strides = [1, 1]} : vector<8x128xf32> to vector<8x32xf32>
    %91 = vector.extract_strided_slice %89 {offsets = [0, 32], sizes = [8, 32], strides = [1, 1]} : vector<8x128xf32> to vector<8x32xf32>
    %92 = vector.extract_strided_slice %89 {offsets = [0, 64], sizes = [8, 32], strides = [1, 1]} : vector<8x128xf32> to vector<8x32xf32>
    %cst_28 = arith.constant 2.000000e+00 : f32
    %93 = vector.broadcast %cst_28 : f32 to vector<8x32xf32>
    %94 = arith.mulf %93, %92 : vector<8x32xf32>
    %cst_29 = arith.constant 1.000000e+00 : f32
    %95 = vector.broadcast %cst_29 : f32 to vector<8x32xf32>
    %96 = arith.subf %94, %95 : vector<8x32xf32>
    %97 = vector.extract_strided_slice %89 {offsets = [0, 96], sizes = [8, 32], strides = [1, 1]} : vector<8x128xf32> to vector<8x32xf32>
    %98 = arith.mulf %91, %57 : vector<8x32xf32>
    %99 = arith.mulf %90, %96 : vector<8x32xf32>
    %100 = arith.addf %98, %99 : vector<8x32xf32>
    %101 = math.tanh %100 : vector<8x32xf32>
    %102 = arith.mulf %97, %101 : vector<8x32xf32>
    %c8_30 = arith.constant 8 : index
    %c0_31 = arith.constant 0 : index
    %103 = vector.load %arg4[%c8_30, %c0_31] : memref<64x32xf32, #tpu.memory_space<vmem>>, vector<8x32xf32>
    tpu.vector_store %arg4[%c8_30, %c0_31], %102 {strides = array<i32>} : memref<64x32xf32, #tpu.memory_space<vmem>>, vector<8x32xf32>,
    %104 = vector.extract_strided_slice %13 {offsets = [16, 0], sizes = [8, 128], strides = [1, 1]} : vector<64x128xf32> to vector<8x128xf32>
    %cst_32 = arith.constant dense<0.000000e+00> : vector<8x128xf32>
    %105 = tpu.matmul %81, %0, %cst_32 {dimension_numbers = #tpu.dot_dimension_numbers<[1], [0], [0], [1], [0, 0, 1, 1], [], []>} : vector<8x32xf32>, vector<32x128xf32>, vector<8x128xf32> -> vector<8x128xf32>
    %106 = arith.addf %104, %105 : vector<8x128xf32>
    %107 = arith.negf %106 : vector<8x128xf32>
    %108 = math.exp %107 : vector<8x128xf32>
    %cst_33 = arith.constant 1.000000e+00 : f32
    %109 = vector.broadcast %cst_33 : f32 to vector<8x128xf32>
    %110 = arith.addf %109, %108 : vector<8x128xf32>
    %111 = arith.divf %109, %110 : vector<8x128xf32>
    %112 = vector.extract_strided_slice %111 {offsets = [0, 0], sizes = [8, 32], strides = [1, 1]} : vector<8x128xf32> to vector<8x32xf32>
    %113 = vector.extract_strided_slice %111 {offsets = [0, 32], sizes = [8, 32], strides = [1, 1]} : vector<8x128xf32> to vector<8x32xf32>
    %114 = vector.extract_strided_slice %111 {offsets = [0, 64], sizes = [8, 32], strides = [1, 1]} : vector<8x128xf32> to vector<8x32xf32>
    %cst_34 = arith.constant 2.000000e+00 : f32
    %115 = vector.broadcast %cst_34 : f32 to vector<8x32xf32>
    %116 = arith.mulf %115, %114 : vector<8x32xf32>
    %cst_35 = arith.constant 1.000000e+00 : f32
    %117 = vector.broadcast %cst_35 : f32 to vector<8x32xf32>
    %118 = arith.subf %116, %117 : vector<8x32xf32>
    %119 = vector.extract_strided_slice %111 {offsets = [0, 96], sizes = [8, 32], strides = [1, 1]} : vector<8x128xf32> to vector<8x32xf32>
    %120 = arith.mulf %113, %79 : vector<8x32xf32>
    %121 = arith.mulf %112, %118 : vector<8x32xf32>
    %122 = arith.addf %120, %121 : vector<8x32xf32>
    %123 = math.tanh %122 : vector<8x32xf32>
    %124 = arith.mulf %119, %123 : vector<8x32xf32>
    %125 = tpu.concatenate %124, %102 in 1 : vector<8x32xf32>, vector<8x32xf32> -> vector<8x64xf32>
    %cst_36 = arith.constant dense<0.000000e+00> : vector<8x128xf32>
    %126 = tpu.matmul %125, %1, %cst_36 {dimension_numbers = #tpu.dot_dimension_numbers<[1], [0], [0], [1], [0, 0, 1, 1], [], []>} : vector<8x64xf32>, vector<64x128xf32>, vector<8x128xf32> -> vector<8x128xf32>
    %127 = arith.addf %126, %4 : vector<8x128xf32>
    %128 = arith.negf %127 : vector<8x128xf32>
    %129 = math.exp %128 : vector<8x128xf32>
    %cst_37 = arith.constant 1.000000e+00 : f32
    %130 = vector.broadcast %cst_37 : f32 to vector<8x128xf32>
    %131 = arith.addf %130, %129 : vector<8x128xf32>
    %132 = arith.divf %130, %131 : vector<8x128xf32>
    %133 = vector.extract_strided_slice %132 {offsets = [0, 0], sizes = [8, 32], strides = [1, 1]} : vector<8x128xf32> to vector<8x32xf32>
    %134 = vector.extract_strided_slice %132 {offsets = [0, 32], sizes = [8, 32], strides = [1, 1]} : vector<8x128xf32> to vector<8x32xf32>
    %135 = vector.extract_strided_slice %132 {offsets = [0, 64], sizes = [8, 32], strides = [1, 1]} : vector<8x128xf32> to vector<8x32xf32>
    %cst_38 = arith.constant 2.000000e+00 : f32
    %136 = vector.broadcast %cst_38 : f32 to vector<8x32xf32>
    %137 = arith.mulf %136, %135 : vector<8x32xf32>
    %cst_39 = arith.constant 1.000000e+00 : f32
    %138 = vector.broadcast %cst_39 : f32 to vector<8x32xf32>
    %139 = arith.subf %137, %138 : vector<8x32xf32>
    %140 = vector.extract_strided_slice %132 {offsets = [0, 96], sizes = [8, 32], strides = [1, 1]} : vector<8x128xf32> to vector<8x32xf32>
    %141 = arith.mulf %134, %100 : vector<8x32xf32>
    %142 = arith.mulf %133, %139 : vector<8x32xf32>
    %143 = arith.addf %141, %142 : vector<8x32xf32>
    %144 = math.tanh %143 : vector<8x32xf32>
    %145 = arith.mulf %140, %144 : vector<8x32xf32>
    %c16_40 = arith.constant 16 : index
    %c0_41 = arith.constant 0 : index
    %146 = vector.load %arg4[%c16_40, %c0_41] : memref<64x32xf32, #tpu.memory_space<vmem>>, vector<8x32xf32>
    tpu.vector_store %arg4[%c16_40, %c0_41], %145 {strides = array<i32>} : memref<64x32xf32, #tpu.memory_space<vmem>>, vector<8x32xf32>,
    %147 = vector.extract_strided_slice %13 {offsets = [24, 0], sizes = [8, 128], strides = [1, 1]} : vector<64x128xf32> to vector<8x128xf32>
    %cst_42 = arith.constant dense<0.000000e+00> : vector<8x128xf32>
    %148 = tpu.matmul %124, %0, %cst_42 {dimension_numbers = #tpu.dot_dimension_numbers<[1], [0], [0], [1], [0, 0, 1, 1], [], []>} : vector<8x32xf32>, vector<32x128xf32>, vector<8x128xf32> -> vector<8x128xf32>
    %149 = arith.addf %147, %148 : vector<8x128xf32>
    %150 = arith.negf %149 : vector<8x128xf32>
    %151 = math.exp %150 : vector<8x128xf32>
    %cst_43 = arith.constant 1.000000e+00 : f32
    %152 = vector.broadcast %cst_43 : f32 to vector<8x128xf32>
    %153 = arith.addf %152, %151 : vector<8x128xf32>
    %154 = arith.divf %152, %153 : vector<8x128xf32>
    %155 = vector.extract_strided_slice %154 {offsets = [0, 0], sizes = [8, 32], strides = [1, 1]} : vector<8x128xf32> to vector<8x32xf32>
    %156 = vector.extract_strided_slice %154 {offsets = [0, 32], sizes = [8, 32], strides = [1, 1]} : vector<8x128xf32> to vector<8x32xf32>
    %157 = vector.extract_strided_slice %154 {offsets = [0, 64], sizes = [8, 32], strides = [1, 1]} : vector<8x128xf32> to vector<8x32xf32>
    %cst_44 = arith.constant 2.000000e+00 : f32
    %158 = vector.broadcast %cst_44 : f32 to vector<8x32xf32>
    %159 = arith.mulf %158, %157 : vector<8x32xf32>
    %cst_45 = arith.constant 1.000000e+00 : f32
    %160 = vector.broadcast %cst_45 : f32 to vector<8x32xf32>
    %161 = arith.subf %159, %160 : vector<8x32xf32>
    %162 = vector.extract_strided_slice %154 {offsets = [0, 96], sizes = [8, 32], strides = [1, 1]} : vector<8x128xf32> to vector<8x32xf32>
    %163 = arith.mulf %156, %122 : vector<8x32xf32>
    %164 = arith.mulf %155, %161 : vector<8x32xf32>
    %165 = arith.addf %163, %164 : vector<8x32xf32>
    %166 = math.tanh %165 : vector<8x32xf32>
    %167 = arith.mulf %162, %166 : vector<8x32xf32>
    %168 = tpu.concatenate %167, %145 in 1 : vector<8x32xf32>, vector<8x32xf32> -> vector<8x64xf32>
    %cst_46 = arith.constant dense<0.000000e+00> : vector<8x128xf32>
    %169 = tpu.matmul %168, %1, %cst_46 {dimension_numbers = #tpu.dot_dimension_numbers<[1], [0], [0], [1], [0, 0, 1, 1], [], []>} : vector<8x64xf32>, vector<64x128xf32>, vector<8x128xf32> -> vector<8x128xf32>
    %170 = arith.addf %169, %4 : vector<8x128xf32>
    %171 = arith.negf %170 : vector<8x128xf32>
    %172 = math.exp %171 : vector<8x128xf32>
    %cst_47 = arith.constant 1.000000e+00 : f32
    %173 = vector.broadcast %cst_47 : f32 to vector<8x128xf32>
    %174 = arith.addf %173, %172 : vector<8x128xf32>
    %175 = arith.divf %173, %174 : vector<8x128xf32>
    %176 = vector.extract_strided_slice %175 {offsets = [0, 0], sizes = [8, 32], strides = [1, 1]} : vector<8x128xf32> to vector<8x32xf32>
    %177 = vector.extract_strided_slice %175 {offsets = [0, 32], sizes = [8, 32], strides = [1, 1]} : vector<8x128xf32> to vector<8x32xf32>
    %178 = vector.extract_strided_slice %175 {offsets = [0, 64], sizes = [8, 32], strides = [1, 1]} : vector<8x128xf32> to vector<8x32xf32>
    %cst_48 = arith.constant 2.000000e+00 : f32
    %179 = vector.broadcast %cst_48 : f32 to vector<8x32xf32>
    %180 = arith.mulf %179, %178 : vector<8x32xf32>
    %cst_49 = arith.constant 1.000000e+00 : f32
    %181 = vector.broadcast %cst_49 : f32 to vector<8x32xf32>
    %182 = arith.subf %180, %181 : vector<8x32xf32>
    %183 = vector.extract_strided_slice %175 {offsets = [0, 96], sizes = [8, 32], strides = [1, 1]} : vector<8x128xf32> to vector<8x32xf32>
    %184 = arith.mulf %177, %143 : vector<8x32xf32>
    %185 = arith.mulf %176, %182 : vector<8x32xf32>
    %186 = arith.addf %184, %185 : vector<8x32xf32>
    %187 = math.tanh %186 : vector<8x32xf32>
    %188 = arith.mulf %183, %187 : vector<8x32xf32>
    %c24_50 = arith.constant 24 : index
    %c0_51 = arith.constant 0 : index
    %189 = vector.load %arg4[%c24_50, %c0_51] : memref<64x32xf32, #tpu.memory_space<vmem>>, vector<8x32xf32>
    tpu.vector_store %arg4[%c24_50, %c0_51], %188 {strides = array<i32>} : memref<64x32xf32, #tpu.memory_space<vmem>>, vector<8x32xf32>,
    %190 = vector.extract_strided_slice %13 {offsets = [32, 0], sizes = [8, 128], strides = [1, 1]} : vector<64x128xf32> to vector<8x128xf32>
    %cst_52 = arith.constant dense<0.000000e+00> : vector<8x128xf32>
    %191 = tpu.matmul %167, %0, %cst_52 {dimension_numbers = #tpu.dot_dimension_numbers<[1], [0], [0], [1], [0, 0, 1, 1], [], []>} : vector<8x32xf32>, vector<32x128xf32>, vector<8x128xf32> -> vector<8x128xf32>
    %192 = arith.addf %190, %191 : vector<8x128xf32>
    %193 = arith.negf %192 : vector<8x128xf32>
    %194 = math.exp %193 : vector<8x128xf32>
    %cst_53 = arith.constant 1.000000e+00 : f32
    %195 = vector.broadcast %cst_53 : f32 to vector<8x128xf32>
    %196 = arith.addf %195, %194 : vector<8x128xf32>
    %197 = arith.divf %195, %196 : vector<8x128xf32>
    %198 = vector.extract_strided_slice %197 {offsets = [0, 0], sizes = [8, 32], strides = [1, 1]} : vector<8x128xf32> to vector<8x32xf32>
    %199 = vector.extract_strided_slice %197 {offsets = [0, 32], sizes = [8, 32], strides = [1, 1]} : vector<8x128xf32> to vector<8x32xf32>
    %200 = vector.extract_strided_slice %197 {offsets = [0, 64], sizes = [8, 32], strides = [1, 1]} : vector<8x128xf32> to vector<8x32xf32>
    %cst_54 = arith.constant 2.000000e+00 : f32
    %201 = vector.broadcast %cst_54 : f32 to vector<8x32xf32>
    %202 = arith.mulf %201, %200 : vector<8x32xf32>
    %cst_55 = arith.constant 1.000000e+00 : f32
    %203 = vector.broadcast %cst_55 : f32 to vector<8x32xf32>
    %204 = arith.subf %202, %203 : vector<8x32xf32>
    %205 = vector.extract_strided_slice %197 {offsets = [0, 96], sizes = [8, 32], strides = [1, 1]} : vector<8x128xf32> to vector<8x32xf32>
    %206 = arith.mulf %199, %165 : vector<8x32xf32>
    %207 = arith.mulf %198, %204 : vector<8x32xf32>
    %208 = arith.addf %206, %207 : vector<8x32xf32>
    %209 = math.tanh %208 : vector<8x32xf32>
    %210 = arith.mulf %205, %209 : vector<8x32xf32>
    %211 = tpu.concatenate %210, %188 in 1 : vector<8x32xf32>, vector<8x32xf32> -> vector<8x64xf32>
    %cst_56 = arith.constant dense<0.000000e+00> : vector<8x128xf32>
    %212 = tpu.matmul %211, %1, %cst_56 {dimension_numbers = #tpu.dot_dimension_numbers<[1], [0], [0], [1], [0, 0, 1, 1], [], []>} : vector<8x64xf32>, vector<64x128xf32>, vector<8x128xf32> -> vector<8x128xf32>
    %213 = arith.addf %212, %4 : vector<8x128xf32>
    %214 = arith.negf %213 : vector<8x128xf32>
    %215 = math.exp %214 : vector<8x128xf32>
    %cst_57 = arith.constant 1.000000e+00 : f32
    %216 = vector.broadcast %cst_57 : f32 to vector<8x128xf32>
    %217 = arith.addf %216, %215 : vector<8x128xf32>
    %218 = arith.divf %216, %217 : vector<8x128xf32>
    %219 = vector.extract_strided_slice %218 {offsets = [0, 0], sizes = [8, 32], strides = [1, 1]} : vector<8x128xf32> to vector<8x32xf32>
    %220 = vector.extract_strided_slice %218 {offsets = [0, 32], sizes = [8, 32], strides = [1, 1]} : vector<8x128xf32> to vector<8x32xf32>
    %221 = vector.extract_strided_slice %218 {offsets = [0, 64], sizes = [8, 32], strides = [1, 1]} : vector<8x128xf32> to vector<8x32xf32>
    %cst_58 = arith.constant 2.000000e+00 : f32
    %222 = vector.broadcast %cst_58 : f32 to vector<8x32xf32>
    %223 = arith.mulf %222, %221 : vector<8x32xf32>
    %cst_59 = arith.constant 1.000000e+00 : f32
    %224 = vector.broadcast %cst_59 : f32 to vector<8x32xf32>
    %225 = arith.subf %223, %224 : vector<8x32xf32>
    %226 = vector.extract_strided_slice %218 {offsets = [0, 96], sizes = [8, 32], strides = [1, 1]} : vector<8x128xf32> to vector<8x32xf32>
    %227 = arith.mulf %220, %186 : vector<8x32xf32>
    %228 = arith.mulf %219, %225 : vector<8x32xf32>
    %229 = arith.addf %227, %228 : vector<8x32xf32>
    %230 = math.tanh %229 : vector<8x32xf32>
    %231 = arith.mulf %226, %230 : vector<8x32xf32>
    %c32 = arith.constant 32 : index
    %c0_60 = arith.constant 0 : index
    %232 = vector.load %arg4[%c32, %c0_60] : memref<64x32xf32, #tpu.memory_space<vmem>>, vector<8x32xf32>
    tpu.vector_store %arg4[%c32, %c0_60], %231 {strides = array<i32>} : memref<64x32xf32, #tpu.memory_space<vmem>>, vector<8x32xf32>,
    %233 = vector.extract_strided_slice %13 {offsets = [40, 0], sizes = [8, 128], strides = [1, 1]} : vector<64x128xf32> to vector<8x128xf32>
    %cst_61 = arith.constant dense<0.000000e+00> : vector<8x128xf32>
    %234 = tpu.matmul %210, %0, %cst_61 {dimension_numbers = #tpu.dot_dimension_numbers<[1], [0], [0], [1], [0, 0, 1, 1], [], []>} : vector<8x32xf32>, vector<32x128xf32>, vector<8x128xf32> -> vector<8x128xf32>
    %235 = arith.addf %233, %234 : vector<8x128xf32>
    %236 = arith.negf %235 : vector<8x128xf32>
    %237 = math.exp %236 : vector<8x128xf32>
    %cst_62 = arith.constant 1.000000e+00 : f32
    %238 = vector.broadcast %cst_62 : f32 to vector<8x128xf32>
    %239 = arith.addf %238, %237 : vector<8x128xf32>
    %240 = arith.divf %238, %239 : vector<8x128xf32>
    %241 = vector.extract_strided_slice %240 {offsets = [0, 0], sizes = [8, 32], strides = [1, 1]} : vector<8x128xf32> to vector<8x32xf32>
    %242 = vector.extract_strided_slice %240 {offsets = [0, 32], sizes = [8, 32], strides = [1, 1]} : vector<8x128xf32> to vector<8x32xf32>
    %243 = vector.extract_strided_slice %240 {offsets = [0, 64], sizes = [8, 32], strides = [1, 1]} : vector<8x128xf32> to vector<8x32xf32>
    %cst_63 = arith.constant 2.000000e+00 : f32
    %244 = vector.broadcast %cst_63 : f32 to vector<8x32xf32>
    %245 = arith.mulf %244, %243 : vector<8x32xf32>
    %cst_64 = arith.constant 1.000000e+00 : f32
    %246 = vector.broadcast %cst_64 : f32 to vector<8x32xf32>
    %247 = arith.subf %245, %246 : vector<8x32xf32>
    %248 = vector.extract_strided_slice %240 {offsets = [0, 96], sizes = [8, 32], strides = [1, 1]} : vector<8x128xf32> to vector<8x32xf32>
    %249 = arith.mulf %242, %208 : vector<8x32xf32>
    %250 = arith.mulf %241, %247 : vector<8x32xf32>
    %251 = arith.addf %249, %250 : vector<8x32xf32>
    %252 = math.tanh %251 : vector<8x32xf32>
    %253 = arith.mulf %248, %252 : vector<8x32xf32>
    %254 = tpu.concatenate %253, %231 in 1 : vector<8x32xf32>, vector<8x32xf32> -> vector<8x64xf32>
    %cst_65 = arith.constant dense<0.000000e+00> : vector<8x128xf32>
    %255 = tpu.matmul %254, %1, %cst_65 {dimension_numbers = #tpu.dot_dimension_numbers<[1], [0], [0], [1], [0, 0, 1, 1], [], []>} : vector<8x64xf32>, vector<64x128xf32>, vector<8x128xf32> -> vector<8x128xf32>
    %256 = arith.addf %255, %4 : vector<8x128xf32>
    %257 = arith.negf %256 : vector<8x128xf32>
    %258 = math.exp %257 : vector<8x128xf32>
    %cst_66 = arith.constant 1.000000e+00 : f32
    %259 = vector.broadcast %cst_66 : f32 to vector<8x128xf32>
    %260 = arith.addf %259, %258 : vector<8x128xf32>
    %261 = arith.divf %259, %260 : vector<8x128xf32>
    %262 = vector.extract_strided_slice %261 {offsets = [0, 0], sizes = [8, 32], strides = [1, 1]} : vector<8x128xf32> to vector<8x32xf32>
    %263 = vector.extract_strided_slice %261 {offsets = [0, 32], sizes = [8, 32], strides = [1, 1]} : vector<8x128xf32> to vector<8x32xf32>
    %264 = vector.extract_strided_slice %261 {offsets = [0, 64], sizes = [8, 32], strides = [1, 1]} : vector<8x128xf32> to vector<8x32xf32>
    %cst_67 = arith.constant 2.000000e+00 : f32
    %265 = vector.broadcast %cst_67 : f32 to vector<8x32xf32>
    %266 = arith.mulf %265, %264 : vector<8x32xf32>
    %cst_68 = arith.constant 1.000000e+00 : f32
    %267 = vector.broadcast %cst_68 : f32 to vector<8x32xf32>
    %268 = arith.subf %266, %267 : vector<8x32xf32>
    %269 = vector.extract_strided_slice %261 {offsets = [0, 96], sizes = [8, 32], strides = [1, 1]} : vector<8x128xf32> to vector<8x32xf32>
    %270 = arith.mulf %263, %229 : vector<8x32xf32>
    %271 = arith.mulf %262, %268 : vector<8x32xf32>
    %272 = arith.addf %270, %271 : vector<8x32xf32>
    %273 = math.tanh %272 : vector<8x32xf32>
    %274 = arith.mulf %269, %273 : vector<8x32xf32>
    %c40 = arith.constant 40 : index
    %c0_69 = arith.constant 0 : index
    %275 = vector.load %arg4[%c40, %c0_69] : memref<64x32xf32, #tpu.memory_space<vmem>>, vector<8x32xf32>
    tpu.vector_store %arg4[%c40, %c0_69], %274 {strides = array<i32>} : memref<64x32xf32, #tpu.memory_space<vmem>>, vector<8x32xf32>,
    %276 = vector.extract_strided_slice %13 {offsets = [48, 0], sizes = [8, 128], strides = [1, 1]} : vector<64x128xf32> to vector<8x128xf32>
    %cst_70 = arith.constant dense<0.000000e+00> : vector<8x128xf32>
    %277 = tpu.matmul %253, %0, %cst_70 {dimension_numbers = #tpu.dot_dimension_numbers<[1], [0], [0], [1], [0, 0, 1, 1], [], []>} : vector<8x32xf32>, vector<32x128xf32>, vector<8x128xf32> -> vector<8x128xf32>
    %278 = arith.addf %276, %277 : vector<8x128xf32>
    %279 = arith.negf %278 : vector<8x128xf32>
    %280 = math.exp %279 : vector<8x128xf32>
    %cst_71 = arith.constant 1.000000e+00 : f32
    %281 = vector.broadcast %cst_71 : f32 to vector<8x128xf32>
    %282 = arith.addf %281, %280 : vector<8x128xf32>
    %283 = arith.divf %281, %282 : vector<8x128xf32>
    %284 = vector.extract_strided_slice %283 {offsets = [0, 0], sizes = [8, 32], strides = [1, 1]} : vector<8x128xf32> to vector<8x32xf32>
    %285 = vector.extract_strided_slice %283 {offsets = [0, 32], sizes = [8, 32], strides = [1, 1]} : vector<8x128xf32> to vector<8x32xf32>
    %286 = vector.extract_strided_slice %283 {offsets = [0, 64], sizes = [8, 32], strides = [1, 1]} : vector<8x128xf32> to vector<8x32xf32>
    %cst_72 = arith.constant 2.000000e+00 : f32
    %287 = vector.broadcast %cst_72 : f32 to vector<8x32xf32>
    %288 = arith.mulf %287, %286 : vector<8x32xf32>
    %cst_73 = arith.constant 1.000000e+00 : f32
    %289 = vector.broadcast %cst_73 : f32 to vector<8x32xf32>
    %290 = arith.subf %288, %289 : vector<8x32xf32>
    %291 = vector.extract_strided_slice %283 {offsets = [0, 96], sizes = [8, 32], strides = [1, 1]} : vector<8x128xf32> to vector<8x32xf32>
    %292 = arith.mulf %285, %251 : vector<8x32xf32>
    %293 = arith.mulf %284, %290 : vector<8x32xf32>
    %294 = arith.addf %292, %293 : vector<8x32xf32>
    %295 = math.tanh %294 : vector<8x32xf32>
    %296 = arith.mulf %291, %295 : vector<8x32xf32>
    %297 = tpu.concatenate %296, %274 in 1 : vector<8x32xf32>, vector<8x32xf32> -> vector<8x64xf32>
    %cst_74 = arith.constant dense<0.000000e+00> : vector<8x128xf32>
    %298 = tpu.matmul %297, %1, %cst_74 {dimension_numbers = #tpu.dot_dimension_numbers<[1], [0], [0], [1], [0, 0, 1, 1], [], []>} : vector<8x64xf32>, vector<64x128xf32>, vector<8x128xf32> -> vector<8x128xf32>
    %299 = arith.addf %298, %4 : vector<8x128xf32>
    %300 = arith.negf %299 : vector<8x128xf32>
    %301 = math.exp %300 : vector<8x128xf32>
    %cst_75 = arith.constant 1.000000e+00 : f32
    %302 = vector.broadcast %cst_75 : f32 to vector<8x128xf32>
    %303 = arith.addf %302, %301 : vector<8x128xf32>
    %304 = arith.divf %302, %303 : vector<8x128xf32>
    %305 = vector.extract_strided_slice %304 {offsets = [0, 0], sizes = [8, 32], strides = [1, 1]} : vector<8x128xf32> to vector<8x32xf32>
    %306 = vector.extract_strided_slice %304 {offsets = [0, 32], sizes = [8, 32], strides = [1, 1]} : vector<8x128xf32> to vector<8x32xf32>
    %307 = vector.extract_strided_slice %304 {offsets = [0, 64], sizes = [8, 32], strides = [1, 1]} : vector<8x128xf32> to vector<8x32xf32>
    %cst_76 = arith.constant 2.000000e+00 : f32
    %308 = vector.broadcast %cst_76 : f32 to vector<8x32xf32>
    %309 = arith.mulf %308, %307 : vector<8x32xf32>
    %cst_77 = arith.constant 1.000000e+00 : f32
    %310 = vector.broadcast %cst_77 : f32 to vector<8x32xf32>
    %311 = arith.subf %309, %310 : vector<8x32xf32>
    %312 = vector.extract_strided_slice %304 {offsets = [0, 96], sizes = [8, 32], strides = [1, 1]} : vector<8x128xf32> to vector<8x32xf32>
    %313 = arith.mulf %306, %272 : vector<8x32xf32>
    %314 = arith.mulf %305, %311 : vector<8x32xf32>
    %315 = arith.addf %313, %314 : vector<8x32xf32>
    %316 = math.tanh %315 : vector<8x32xf32>
    %317 = arith.mulf %312, %316 : vector<8x32xf32>
    %c48 = arith.constant 48 : index
    %c0_78 = arith.constant 0 : index
    %318 = vector.load %arg4[%c48, %c0_78] : memref<64x32xf32, #tpu.memory_space<vmem>>, vector<8x32xf32>
    tpu.vector_store %arg4[%c48, %c0_78], %317 {strides = array<i32>} : memref<64x32xf32, #tpu.memory_space<vmem>>, vector<8x32xf32>,
    %319 = vector.extract_strided_slice %13 {offsets = [56, 0], sizes = [8, 128], strides = [1, 1]} : vector<64x128xf32> to vector<8x128xf32>
    %cst_79 = arith.constant dense<0.000000e+00> : vector<8x128xf32>
    %320 = tpu.matmul %296, %0, %cst_79 {dimension_numbers = #tpu.dot_dimension_numbers<[1], [0], [0], [1], [0, 0, 1, 1], [], []>} : vector<8x32xf32>, vector<32x128xf32>, vector<8x128xf32> -> vector<8x128xf32>
    %321 = arith.addf %319, %320 : vector<8x128xf32>
    %322 = arith.negf %321 : vector<8x128xf32>
    %323 = math.exp %322 : vector<8x128xf32>
    %cst_80 = arith.constant 1.000000e+00 : f32
    %324 = vector.broadcast %cst_80 : f32 to vector<8x128xf32>
    %325 = arith.addf %324, %323 : vector<8x128xf32>
    %326 = arith.divf %324, %325 : vector<8x128xf32>
    %327 = vector.extract_strided_slice %326 {offsets = [0, 0], sizes = [8, 32], strides = [1, 1]} : vector<8x128xf32> to vector<8x32xf32>
    %328 = vector.extract_strided_slice %326 {offsets = [0, 32], sizes = [8, 32], strides = [1, 1]} : vector<8x128xf32> to vector<8x32xf32>
    %329 = vector.extract_strided_slice %326 {offsets = [0, 64], sizes = [8, 32], strides = [1, 1]} : vector<8x128xf32> to vector<8x32xf32>
    %cst_81 = arith.constant 2.000000e+00 : f32
    %330 = vector.broadcast %cst_81 : f32 to vector<8x32xf32>
    %331 = arith.mulf %330, %329 : vector<8x32xf32>
    %cst_82 = arith.constant 1.000000e+00 : f32
    %332 = vector.broadcast %cst_82 : f32 to vector<8x32xf32>
    %333 = arith.subf %331, %332 : vector<8x32xf32>
    %334 = vector.extract_strided_slice %326 {offsets = [0, 96], sizes = [8, 32], strides = [1, 1]} : vector<8x128xf32> to vector<8x32xf32>
    %335 = arith.mulf %328, %294 : vector<8x32xf32>
    %336 = arith.mulf %327, %333 : vector<8x32xf32>
    %337 = arith.addf %335, %336 : vector<8x32xf32>
    %338 = math.tanh %337 : vector<8x32xf32>
    %339 = arith.mulf %334, %338 : vector<8x32xf32>
    %340 = tpu.concatenate %339, %317 in 1 : vector<8x32xf32>, vector<8x32xf32> -> vector<8x64xf32>
    %cst_83 = arith.constant dense<0.000000e+00> : vector<8x128xf32>
    %341 = tpu.matmul %340, %1, %cst_83 {dimension_numbers = #tpu.dot_dimension_numbers<[1], [0], [0], [1], [0, 0, 1, 1], [], []>} : vector<8x64xf32>, vector<64x128xf32>, vector<8x128xf32> -> vector<8x128xf32>
    %342 = arith.addf %341, %4 : vector<8x128xf32>
    %343 = arith.negf %342 : vector<8x128xf32>
    %344 = math.exp %343 : vector<8x128xf32>
    %cst_84 = arith.constant 1.000000e+00 : f32
    %345 = vector.broadcast %cst_84 : f32 to vector<8x128xf32>
    %346 = arith.addf %345, %344 : vector<8x128xf32>
    %347 = arith.divf %345, %346 : vector<8x128xf32>
    %348 = vector.extract_strided_slice %347 {offsets = [0, 0], sizes = [8, 32], strides = [1, 1]} : vector<8x128xf32> to vector<8x32xf32>
    %349 = vector.extract_strided_slice %347 {offsets = [0, 32], sizes = [8, 32], strides = [1, 1]} : vector<8x128xf32> to vector<8x32xf32>
    %350 = vector.extract_strided_slice %347 {offsets = [0, 64], sizes = [8, 32], strides = [1, 1]} : vector<8x128xf32> to vector<8x32xf32>
    %cst_85 = arith.constant 2.000000e+00 : f32
    %351 = vector.broadcast %cst_85 : f32 to vector<8x32xf32>
    %352 = arith.mulf %351, %350 : vector<8x32xf32>
    %cst_86 = arith.constant 1.000000e+00 : f32
    %353 = vector.broadcast %cst_86 : f32 to vector<8x32xf32>
    %354 = arith.subf %352, %353 : vector<8x32xf32>
    %355 = vector.extract_strided_slice %347 {offsets = [0, 96], sizes = [8, 32], strides = [1, 1]} : vector<8x128xf32> to vector<8x32xf32>
    %356 = arith.mulf %349, %315 : vector<8x32xf32>
    %357 = arith.mulf %348, %354 : vector<8x32xf32>
    %358 = arith.addf %356, %357 : vector<8x32xf32>
    %359 = math.tanh %358 : vector<8x32xf32>
    %360 = arith.mulf %355, %359 : vector<8x32xf32>
    %c56 = arith.constant 56 : index
    %c0_87 = arith.constant 0 : index
    %361 = vector.load %arg4[%c56, %c0_87] : memref<64x32xf32, #tpu.memory_space<vmem>>, vector<8x32xf32>
    tpu.vector_store %arg4[%c56, %c0_87], %360 {strides = array<i32>} : memref<64x32xf32, #tpu.memory_space<vmem>>, vector<8x32xf32>,
    %c0_88 = arith.constant 0 : index
    %c0_89 = arith.constant 0 : index
    %362 = vector.load %arg4[%c0_88, %c0_89] : memref<64x32xf32, #tpu.memory_space<vmem>>, vector<64x32xf32>
    %cst_90 = arith.constant dense<0.000000e+00> : vector<64x128xf32>
    %363 = tpu.matmul %362, %5, %cst_90 {dimension_numbers = #tpu.dot_dimension_numbers<[1], [0], [0], [1], [0, 0, 1, 1], [], []>} : vector<64x32xf32>, vector<32x128xf32>, vector<64x128xf32> -> vector<64x128xf32>
    %c0_91 = arith.constant 0 : index
    %c0_92 = arith.constant 0 : index
    %364 = vector.load %arg3[%c0_91, %c0_92] : memref<64x128xf32, #tpu.memory_space<vmem>>, vector<64x128xf32>
    tpu.vector_store %arg3[%c0_91, %c0_92], %363 {strides = array<i32>} : memref<64x128xf32, #tpu.memory_space<vmem>>, vector<64x128xf32>,
    return
  }
}

</mosaic_0001>

<bundles_post_ra>
// kernel: rnn_model_forward.1
= control target key start
LH: loop header
LB: loop body
LE: loop exit
PB: predicated region body
PF: predicated region fallthrough
CT: control target
= control target key end

     0   :  { %8 = vsyncpa [#allocation4], 0  ;;  %s2882_s12 = smov [#allocation3]   ;;  %s3359_s0 = inlined_call_operand.vmem [shape: s32[64,1], index: 0, kind: input, shape index: {}]   ;;  %s3360_s1 = inlined_call_operand.hbm [shape: f32[200,128], index: 1, kind: input, shape index: {}]   ;;  %s3361_s2 = inlined_call_operand.vmem [shape: f32[32,32], index: 2, kind: input, shape index: {}]   ;;  %s3362_s3 = inlined_call_operand.vmem [shape: f32[64,128], index: 3, kind: output, shape index: {}]  }
   0x1   :  { %s16_s13 = sshll.u32 %s2882_s12, 4  ;;  %s2858_s16 = scalar_lea.hbm %s3360_s1, 3200  ;;  %s17_s13 = int_to_ptr.vmem [resolvable:$true] %s16_s13 }
   0x2   :  { %p2859_p0 = scmp.ne.s32.totalorder %s3360_s1, %s2858_s16  ;;  %p2862_p1 = scmp.lt.u32.totalorder %s2858_s16, %s3360_s1 }
   0x4   :  { %p2864_p2 = pnand %p2862_p1, %p2859_p0 }
   0x6   :  { %2867 = shalt.err (!%p2864_p2)
}
   0x7   :  { %s2868_s21 = scalar_lea.vmem %s17_s13, 3200  ;;  %p2873_p4 = scmp.lt.s32.totalorder %s17_s13, %s17_s13 }
   0x8   :  { %p2869_p3 = scmp.ne.s32.totalorder %s17_s13, %s2868_s21  ;;  %p2874_p5 = scmp.lt.s32.totalorder %s2868_s21, %s2868_s21 }
   0xa   :  { %p2875_p6 = por %p2874_p5, %p2873_p4 }
   0xc   :  { %p2876_p7 = pnand %p2875_p6, %p2869_p3 }
   0xe   :  { %2879 = shalt.err (!%p2876_p7)
}
   0xf   :  { %s2883_s22 = smov 128   ;;  %s2884_s23 = smov 8  }
  0x10   :  { %22 = dma.hbm_to_vmem [thread:$0]  %s3360_s1, 3200, %s17_s13, [#allocation4], %s2883_s22, %s2883_s22, %s2884_s23  }
  0x11   :  { %2880 = dma.done.wait [#allocation4], 3200  }
  0x12   :  { %2881 = vsyncadd [#allocation4], 4294964096  ;;  %v2885_v0 = vmov 0   ;;  %v2886_v1 = vmov 0.0|0.0   ;;  %v49_v2 = vld [vmem:[%s3359_s0] sm:$0xff]  ;;  %v108_v4 = vld [vmem:[#allocation3 + $0x8] sm:$0xff]  ;;  %v57_v24 = vlaneseq }
  0x13   :  { %2760 = vset.pattern.permute.xlu0 %v2885_v0  ;;  %2599 = vmatprep.subr.bf16.mxu1 %v2886_v1  ;;  %v107_v3 = vld [vmem:[#allocation3] sm:$0xff]  ;;  %v109_v5 = vld [vmem:[#allocation3 + $0x10] sm:$0xff]  ;;  %v110_v6 = vld [vmem:[#allocation3 + $0x18] sm:$0xff]  ;;  %vm2887_vm0 = vmmov 0   ;;  %v2888_v21 = vmov 0.0   ;;  %vm249_vm1 = vcmask 261120  }
  0x14   :  { %2761 = vset.pattern.permute.xlu1 %v2885_v0  ;;  %60 = vperm.xlu0 %2760, %v49_v2   ;;  %v50_v7 = vld [vmem:[%s3359_s0 + $0x8] sm:$0xff]  ;;  %v2583_v8 = vpack.c.bf16 %v108_v4, %v107_v3  ;;  %v2587_v9 = vpack.c.bf16 %v110_v6, %v109_v5  ;;  %v28_v10 = vld [vmem:[#allocation3 + $0x40] sm:$0xff]  ;;  %v30_v15 = vld [vmem:[#allocation3 + $0x50] sm:$0xff]  ;;  %v2947_v25 = vand.u32 127, %v57_v24  ;;  %vm115_vm2 = vcmask 523264   ;;  %s2889_s4 = smov 64  }
  0x15   :  { %v111_v11 = vld [vmem:[#allocation3 + $0x20] sm:$0xff]  ;;  %v112_v12 = vld [vmem:[#allocation3 + $0x28] sm:$0xff]  ;;  %v31_v16 = vld [vmem:[#allocation3 + $0x58] sm:$0xff]  ;;  %2331 = vmatprep.mubr.msk.f32.mxu1 %vm2887_vm0, %v2888_v21  ;;  %s2890_s7 = smov 32  }
  0x16   :  { %v29_v13 = vld [vmem:[#allocation3 + $0x48] sm:$0xff]  ;;  %2584 = vmatprep.subr.bf16.mxu0 %v2583_v8  ;;  %v2591_v17 = vpack.c.bf16 %v112_v12, %v111_v11  ;;  %v2933_v18 = vpack.c.bf16 %v31_v16, %v30_v15  ;;  %v113_v19 = vld [vmem:[#allocation3 + $0x30] sm:$0xff]  ;;  %v114_v20 = vld [vmem:[#allocation3 + $0x38] sm:$0xff] }
  0x17   :  { %v2930_v14 = vpack.c.bf16 %v29_v13, %v28_v10  ;;  %2586 = vmatpush3.bf16.msra.mxu0 %v2583_v8  ;;  %v2595_v22 = vpack.c.bf16 %v114_v20, %v113_v19  ;;  %v245_v23 = vld [vmem:[%s3361_s2] sm:$0xff]  ;;  %v246_v41 = vld [vmem:[%s3361_s2 + $0x8] sm:$0xff]  ;;  %v34_v50 = vld [vmem:[#allocation3 + $0x70] sm:$0xff] }
  0x18   :  { %63 = vperm.xlu0 %2760, %v50_v7   ;;  %2588 = vmatprep.subr.bf16.mxu0 %v2587_v9  ;;  %v32_v48 = vld [vmem:[#allocation3 + $0x60] sm:$0xff]  ;;  %v33_v49 = vld [vmem:[#allocation3 + $0x68] sm:$0xff]  ;;  %v35_v52 = vld [vmem:[#allocation3 + $0x78] sm:$0xff] }
  0x19   :  { %2601 = vmatpush3.bf16.msra.mxu1 %v2930_v14  ;;  %v2970_v51 = vpack.c.bf16 %v33_v49, %v32_v48  ;;  %v2973_v53 = vpack.c.bf16 %v35_v52, %v34_v50  ;;  %v36_v54 = vld [vmem:[#allocation3 + $0x80] sm:$0xff]  ;;  %v37_v55 = vld [vmem:[#allocation3 + $0x88] sm:$0xff]  ;;  %v38_v57 = vld [vmem:[#allocation3 + $0x90] sm:$0xff] }
  0x1a   :  { %2602 = vmatprep.subr.bf16.mxu1 %v2886_v1  ;;  %v2977_v56 = vpack.c.bf16 %v37_v55, %v36_v54  ;;  %v39_v58 = vld [vmem:[#allocation3 + $0x98] sm:$0xff]  ;;  %v247_v61 = vld [vmem:[%s3361_s2 + $0x10] sm:$0xff]  ;;  %v3011_v4 = vld [vmem:[#allocation3 + $0xa0] ss:$0 sm:$0xff] }
  0x1b   :  { %2590 = vmatpush3.bf16.msra.mxu0 %v2587_v9  ;;  %v2982_v60 = vpack.c.bf16 %v39_v58, %v38_v57 }
  0x1c   :  { %2592 = vmatprep.subr.bf16.mxu0 %v2591_v17 }
  0x1d   :  { %2604 = vmatpush3.bf16.msra.mxu1 %v2933_v18 }
  0x1e   :  { %2605 = vmatprep.subr.bf16.mxu1 %v2886_v1 }
  0x1f   :  { %2594 = vmatpush3.bf16.msra.mxu0 %v2591_v17 }
  0x20   :  { %2332 = vmatmul.mubr.msk.f32.vlgmr.msra.gmra.mrb[0].mxu1 %vm249_vm1, %v245_v23  ;;  %2596 = vmatprep.subr.bf16.mxu0 %v2595_v22  ;;  %v248_v23 = vld [vmem:[%s3361_s2 + $0x18] sm:$0xff] }
  0x21   :  { %2350 = vmatprep.mubr.msk.f32.mxu1 %vm2887_vm0, %v2888_v21  ;;  %2607 = vmatpush3.bf16.msra.mxu1 %v2970_v51 }
  0x22   :  { %2608 = vmatprep.subr.bf16.mxu1 %v2886_v1 }
  0x23   :  { %2598 = vmatpush3.bf16.msra.mxu0 %v2595_v22 }
  0x24   :  { %2635 = vmatprep.subr.bf16.mxu0 %v2886_v1 }
  0x25   :  { %2610 = vmatpush3.bf16.msra.mxu1 %v2973_v53 }
  0x26   :  { %2611 = vmatprep.subr.bf16.mxu1 %v2886_v1 }
  0x29   :  { %2613 = vmatpush3.bf16.msra.mxu1 %v2977_v56 }
  0x2a   :  { %2614 = vmatprep.subr.bf16.mxu1 %v2886_v1 }
  0x2d   :  { %2616 = vmatpush3.bf16.msra.mxu1 %v2982_v60 }
  0x2e   :  { %2617 = vmatprep.subr.bf16.mxu1 %v2886_v1 }
  0x93   :  { %v61_v26 = vpop.permute.xlu0 %60 }
  0x94   :  { %vm83_vm3 = vcmp.eq.s32.totalorder %v61_v26, %v2947_v25 }
  0x95   :  { %v2083_v27 = vsel %vm83_vm3, 1.0, %v2888_v21 }
  0x96   :  { %2311 = vmatprep.mubr.msk.f32.mxu0 %vm115_vm2, %v2083_v27 }
  0x97   :  { %v64_v28 = vpop.permute.xlu0 %63 }
  0x98   :  { %vm84_vm4 = vcmp.eq.s32.totalorder %v64_v28, %v2947_v25 }
  0x99   :  { %v2084_v29 = vsel %vm84_vm4, 1.0, %v2888_v21 }
  0x9a   :  { %2312 = vmatmul.mubr.msk.f32.vlgmr.msra.gmra.mrb[0].mxu0 %vm115_vm2, %v2084_v29 }
  0x9b   :  { %2637 = vmatpush3.bf16.msra.mxu0 %v2930_v14 }
  0x9c   :  { %2638 = vmatprep.subr.bf16.mxu0 %v2886_v1 }
  0x9f   :  { %2640 = vmatpush3.bf16.msra.mxu0 %v2933_v18 }
  0xa0   :  { %2641 = vmatprep.subr.bf16.mxu0 %v2886_v1 }
  0xf3   :  { %v319_v30 = vpop.f32.mrb[0].mxu1 }
  0xf4   :  { %v2333_v31 = vpop.f32.mrb[1].mxu1 }
 0x16d   :  { %v2959_v32 = vpop.f32.mrb[0].mxu0 }
 0x16e   :  { %v206_v33 = vpop.f32.mrb[1].mxu0 }
 0x16f   :  { %v323_v34 = vadd.f32 %v319_v30, %v206_v33 }
 0x171   :  { %v2100_v35 = vmul.f32 -1.442695, %v323_v34 }
 0x173   :  { %2762 = vpow2.f32 %v2100_v35 }
 0x17d   :  { %v2763_v36 = vpop.eup %2762 }
 0x17e   :  { %v327_v37 = vadd.f32 1.0, %v2763_v36 }
 0x180   :  { %2764 = vrcp.f32 %v327_v37 }
 0x18a   :  { %v2765_v38 = vpop.eup %2764 }
 0x18b   :  { %v330_v39 = vmul.f32 2.0, %v2765_v38 }
 0x18d   :  { %v2101_v40 = vadd.f32 -1.0, %v330_v39 }
 0x18f   :  { %338 = vrot.lane.b32.xlu1 %v2101_v40, %s2889_s4  ;;  %v51_v40 = vld [vmem:[%s3359_s0 + $0x10] sm:$0xff] }
 0x193   :  { %333 = vrot.lane.b32.xlu1 %v246_v41, %s2890_s7  ;;  %v53_v41 = vld [vmem:[%s3359_s0 + $0x20] sm:$0xff] }
 0x201   :  { %v339_v42 = vpop.permute.xlu1 %338 }
 0x202   :  { %v341_v43 = vmul.f32 %v2765_v38, %v339_v42 }
 0x204   :  { %343 = vrot.lane.b32.xlu0 %v341_v43, %s2890_s7  ;;  %v52_v43 = vld [vmem:[%s3359_s0 + $0x18] sm:$0xff] }
 0x205   :  { %v334_v44 = vpop.permute.xlu1 %333 }
 0x206   :  { %v336_v45 = vmul.f32 %v2765_v38, %v334_v44  ;;  %v55_v44 = vld [vmem:[%s3359_s0 + $0x30] sm:$0xff] }
 0x276   :  { %v344_v46 = vpop.permute.xlu0 %343 }
 0x277   :  { %v2967_v47 = vadd.f32 %v344_v46, %v336_v45  ;;  %v54_v45 = vld [vmem:[%s3359_s0 + $0x28] sm:$0xff]  ;;  %v56_v46 = vld [vmem:[%s3359_s0 + $0x38] sm:$0xff] }
 0x279   :  { %2766 = vtanh.f32 %v2967_v47 }
 0x283   :  { %v2767_v59 = vpop.eup %2766 }
 0x284   :  { %349 = vrot.lane.b32.xlu1 %v2767_v59, %s2889_s4 }
 0x288   :  { %358 = vrot.lane.b32.xlu1 %v247_v61, %s2890_s7 }
 0x2f6   :  { %v350_v62 = vpop.permute.xlu1 %349 }
 0x2f7   :  { %v352_v63 = vmul.f32 %v2765_v38, %v350_v62 }
 0x2f9   :  { %354 = vrot.lane.b32.xlu0 %v352_v63, %s2890_s7 }
 0x2fa   :  { %v359_v0 = vpop.permute.xlu1 %358 }
 0x36b   :  { %v355_v2 = vpop.permute.xlu0 %354 }
 0x36c   :  { %v361_v3 = vsel %vm249_vm1, %v355_v2, %v359_v0 }
 0x36d   :  { %2351 = vmatmul.mubr.msk.f32.vlgmr.msra.gmra.mrb[2].mxu1 %vm115_vm2, %v361_v3 }
 0x36e   :  { %2619 = vmatpush3.bf16.msra.mxu1 %v2930_v14  ;;  %2361 = vmatprep.mubr.msk.f32.mxu1 %vm2887_vm0, %v2888_v21 }
 0x36f   :  { %2620 = vmatprep.subr.bf16.mxu1 %v2886_v1 }
 0x372   :  { %2622 = vmatpush3.bf16.msra.mxu1 %v2933_v18 }
 0x373   :  { %2623 = vmatprep.subr.bf16.mxu1 %v2886_v1 }
 0x375   :  { %2362 = vmatmul.mubr.msk.f32.vlgmr.msra.gmra.mrb[4].mxu1 %vm249_vm1, %v355_v2 }
 0x376   :  { %2625 = vmatpush3.bf16.msra.mxu1 %v2970_v51  ;;  %2380 = vmatprep.mubr.msk.f32.mxu1 %vm2887_vm0, %v2888_v21 }
 0x377   :  { %2626 = vmatprep.subr.bf16.mxu1 %v2886_v1 }
 0x37a   :  { %2628 = vmatpush3.bf16.msra.mxu1 %v2973_v53 }
 0x37b   :  { %2629 = vmatprep.subr.bf16.mxu1 %v2886_v1 }
 0x37e   :  { %2631 = vmatpush3.bf16.msra.mxu1 %v2977_v56 }
 0x37f   :  { %2632 = vmatprep.subr.bf16.mxu1 %v2886_v1 }
 0x382   :  { %2634 = vmatpush3.bf16.msra.mxu1 %v2982_v60 }
 0x383   :  { %2653 = vmatprep.subr.bf16.mxu1 %v2886_v1 }
 0x440   :  { %v431_v5 = vpop.f32.mrb[2].mxu1 }
 0x441   :  { %v432_v6 = vadd.f32 %v3011_v4, %v431_v5  ;;  %v2352_v7 = vpop.f32.mrb[3].mxu1 }
 0x443   :  { %v2103_v8 = vmul.f32 -1.442695, %v432_v6 }
 0x445   :  { %2768 = vpow2.f32 %v2103_v8 }
 0x448   :  { %v537_v9 = vpop.f32.mrb[4].mxu1 }
 0x449   :  { %v541_v10 = vadd.f32 %v2959_v32, %v537_v9  ;;  %v2363_v11 = vpop.f32.mrb[5].mxu1 }
 0x44b   :  { %v2106_v12 = vmul.f32 -1.442695, %v541_v10 }
 0x44d   :  { %2770 = vpow2.f32 %v2106_v12 }
 0x44f   :  { %v2769_v13 = vpop.eup %2768 }
 0x450   :  { %v438_v15 = vadd.f32 1.0, %v2769_v13 }
 0x452   :  { %2772 = vrcp.f32 %v438_v15 }
 0x457   :  { %v2771_v16 = vpop.eup %2770 }
 0x458   :  { %v545_v17 = vadd.f32 1.0, %v2771_v16 }
 0x45a   :  { %2774 = vrcp.f32 %v545_v17 }
 0x45c   :  { %v2773_v19 = vpop.eup %2772 }
 0x45d   :  { %v441_v20 = vmul.f32 2.0, %v2773_v19 }
 0x45f   :  { %v2104_v22 = vadd.f32 -1.0, %v441_v20 }
 0x461   :  { %449 = vrot.lane.b32.xlu0 %v2104_v22, %s2889_s4 }
 0x464   :  { %v2775_v24 = vpop.eup %2774 }
 0x465   :  { %444 = vrot.lane.b32.xlu0 %v248_v23, %s2890_s7  ;;  %v548_v26 = vmul.f32 2.0, %v2775_v24  ;;  %v550_v36 = vmul.f32 %v2775_v24, %v2967_v47 }
 0x467   :  { %v2107_v27 = vadd.f32 -1.0, %v548_v26 }
 0x469   :  { %552 = vrot.lane.b32.xlu1 %v2107_v27, %s2889_s4 }
 0x4d3   :  { %v450_v28 = vpop.permute.xlu0 %449 }
 0x4d4   :  { %v452_v29 = vmul.f32 %v2773_v19, %v450_v28 }
 0x4d6   :  { %454 = vrot.lane.b32.xlu1 %v452_v29, %s2890_s7 }
 0x4d7   :  { %v445_v32 = vpop.permute.xlu0 %444 }
 0x4d8   :  { %v447_v33 = vmul.f32 %v2773_v19, %v445_v32 }
 0x4db   :  { %v553_v30 = vpop.permute.xlu1 %552 }
 0x4dc   :  { %v555_v31 = vmul.f32 %v2775_v24, %v553_v30 }
 0x4de   :  { %557 = vrot.lane.b32.xlu0 %v555_v31, %s2890_s7 }
 0x548   :  { %v455_v34 = vpop.permute.xlu1 %454 }
 0x549   :  { %v3023_v35 = vadd.f32 %v455_v34, %v447_v33 }
 0x54b   :  { %2776 = vtanh.f32 %v3023_v35 }
 0x550   :  { %v558_v37 = vpop.permute.xlu0 %557 }
 0x551   :  { %v3027_v38 = vadd.f32 %v558_v37, %v550_v36 }
 0x553   :  { %2778 = vtanh.f32 %v3027_v38 }
 0x555   :  { %v2777_v39 = vpop.eup %2776 }
 0x556   :  { %460 = vrot.lane.b32.xlu1 %v2777_v39, %s2889_s4 }
 0x55a   :  { %66 = vperm.xlu1 %2761, %v51_v40  }
 0x55d   :  { %v2779_v42 = vpop.eup %2778 }
 0x55e   :  { %563 = vrot.lane.b32.xlu0 %v2779_v42, %s2889_s4  ;;  %72 = vperm.xlu1 %2761, %v53_v41  }
 0x562   :  { %69 = vperm.xlu0 %2760, %v52_v43   ;;  %78 = vperm.xlu1 %2761, %v55_v44  }
 0x566   :  { %75 = vperm.xlu0 %2760, %v54_v45  }
 0x56a   :  { %81 = vperm.xlu0 %2760, %v56_v46  }
 0x5c8   :  { %v461_v47 = vpop.permute.xlu1 %460 }
 0x5c9   :  { %v3050_v48 = vmul.f32 %v2773_v19, %v461_v47 }
 0x5cb   :  { %571 = vrot.lane.b32.xlu0 %v3050_v48, %s2889_s4 }
 0x5d0   :  { %v564_v49 = vpop.permute.xlu0 %563 }
 0x5d1   :  { %v566_v50 = vmul.f32 %v2775_v24, %v564_v49 }
 0x5d3   :  { %568 = vrot.lane.b32.xlu1 %v566_v50, %s2890_s7 }
 0x5d9   :  { %v67_v52 = vpop.permute.xlu1 %66 }
 0x5da   :  { %vm85_vm5 = vcmp.eq.s32.totalorder %v67_v52, %v2947_v25 }
 0x5db   :  { %v2085_v54 = vsel %vm85_vm5, 1.0, %v2888_v21 }
 0x5dc   :  { %2314 = vmatprep.mubr.msk.f32.mxu0 %vm115_vm2, %v2085_v54 }
 0x5dd   :  { %v73_v55 = vpop.permute.xlu1 %72 }
 0x5de   :  { %vm87_vm6 = vcmp.eq.s32.totalorder %v73_v55, %v2947_v25 }
 0x5df   :  { %v2087_v59 = vsel %vm87_vm6, 1.0, %v2888_v21 }
 0x5e1   :  { %v70_v57 = vpop.permute.xlu0 %69  ;;  %v79_v58 = vpop.permute.xlu1 %78 }
 0x5e2   :  { %vm86_vm7 = vcmp.eq.s32.totalorder %v70_v57, %v2947_v25  ;;  %vm89_vm8 = vcmp.eq.s32.totalorder %v79_v58, %v2947_v25 }
 0x5e3   :  { %v2086_v61 = vsel %vm86_vm7, 1.0, %v2888_v21  ;;  %v2089_v63 = vsel %vm89_vm8, 1.0, %v2888_v21 }
 0x5e4   :  { %2315 = vmatmul.mubr.msk.f32.gmra.mrb[2].mxu0 %vm115_vm2, %v2086_v61 }
 0x5e5   :  { %v76_v62 = vpop.permute.xlu0 %75  ;;  %2317 = vmatprep.mubr.msk.f32.mxu0 %vm115_vm2, %v2087_v59 }
 0x5e6   :  { %vm88_vm9 = vcmp.eq.s32.totalorder %v76_v62, %v2947_v25 }
 0x5e7   :  { %v2088_v0 = vsel %vm88_vm9, 1.0, %v2888_v21 }
 0x5e8   :  { %2318 = vmatmul.mubr.msk.f32.gmra.mrb[4].mxu0 %vm115_vm2, %v2088_v0 }
 0x5e9   :  { %v82_v2 = vpop.permute.xlu0 %81  ;;  %2320 = vmatprep.mubr.msk.f32.mxu0 %vm115_vm2, %v2089_v63 }
 0x5ea   :  { %vm90_vm10 = vcmp.eq.s32.totalorder %v82_v2, %v2947_v25 }
 0x5eb   :  { %v2090_v3 = vsel %vm90_vm10, 1.0, %v2888_v21 }
 0x5ec   :  { %2321 = vmatmul.mubr.msk.f32.gmra.mrb[6].mxu0 %vm115_vm2, %v2090_v3 }
 0x5ed   :  { %2391 = vmatprep.mubr.msk.f32.mxu0 %vm2887_vm0, %v2888_v21 }
 0x63d   :  { %v572_v5 = vpop.permute.xlu0 %571 }
 0x645   :  { %v569_v6 = vpop.permute.xlu1 %568 }
 0x646   :  { %v574_v7 = vsel %vm249_vm1, %v569_v6, %v572_v5  ;;  %2392 = vmatmul.mubr.msk.f32.vlgmr.msra.gmra.mrb[8].mxu0 %vm249_vm1, %v569_v6 }
 0x647   :  { %2381 = vmatmul.mubr.msk.f32.vlgmr.msra.gmra.mrb[6].mxu1 %vm115_vm2, %v574_v7  ;;  %2643 = vmatpush3.bf16.msra.mxu0 %v2970_v51 }
 0x648   :  { %2644 = vmatprep.subr.bf16.mxu0 %v2886_v1  ;;  %2655 = vmatpush3.bf16.msra.mxu1 %v2930_v14 }
 0x649   :  { %2656 = vmatprep.subr.bf16.mxu1 %v2886_v1  ;;  %2421 = vmatprep.mubr.msk.f32.mxu1 %vm2887_vm0, %v2888_v21 }
 0x64a   :  { %2410 = vmatprep.mubr.msk.f32.mxu0 %vm2887_vm0, %v2888_v21 }
 0x64b   :  { %2646 = vmatpush3.bf16.msra.mxu0 %v2973_v53 }
 0x64c   :  { %2647 = vmatprep.subr.bf16.mxu0 %v2886_v1  ;;  %2658 = vmatpush3.bf16.msra.mxu1 %v2933_v18 }
 0x64d   :  { %2659 = vmatprep.subr.bf16.mxu1 %v2886_v1 }
 0x64f   :  { %2649 = vmatpush3.bf16.msra.mxu0 %v2977_v56 }
 0x650   :  { %2650 = vmatprep.subr.bf16.mxu0 %v2886_v1 }
 0x653   :  { %2652 = vmatpush3.bf16.msra.mxu0 %v2982_v60 }
 0x654   :  { %2671 = vmatprep.subr.bf16.mxu0 %v2886_v1 }
 0x6b7   :  { %v3094_v25 = vpop.f32.mrb[2].mxu0 }
 0x6b8   :  { %v216_v8 = vpop.f32.mrb[3].mxu0 }
 0x6bb   :  { %v3096_v9 = vpop.f32.mrb[4].mxu0 }
 0x6bc   :  { %v3098_v10 = vpop.f32.mrb[5].mxu0 }
 0x6bf   :  { %v3100_v11 = vpop.f32.mrb[6].mxu0 }
 0x6c0   :  { %v3102_v12 = vpop.f32.mrb[7].mxu0 }
 0x719   :  { %v746_v13 = vpop.f32.mrb[8].mxu0 }
 0x71a   :  { %v750_v15 = vadd.f32 %v746_v13, %v216_v8  ;;  %v644_v16 = vpop.f32.mrb[6].mxu1  ;;  %v2393_v17 = vpop.f32.mrb[9].mxu0 }
 0x71b   :  { %v645_v19 = vadd.f32 %v3011_v4, %v644_v16  ;;  %v2382_v20 = vpop.f32.mrb[7].mxu1 }
 0x71c   :  { %v2112_v22 = vmul.f32 -1.442695, %v750_v15 }
 0x71d   :  { %v2109_v23 = vmul.f32 -1.442695, %v645_v19 }
 0x71e   :  { %2780 = vpow2.f32 %v2112_v22 }
 0x71f   :  { %2782 = vpow2.f32 %v2109_v23 }
 0x728   :  { %v2781_v24 = vpop.eup %2780 }
 0x729   :  { %v2783_v26 = vpop.eup %2782  ;;  %v754_v27 = vadd.f32 1.0, %v2781_v24 }
 0x72a   :  { %v651_v28 = vadd.f32 1.0, %v2783_v26 }
 0x72b   :  { %2784 = vrcp.f32 %v754_v27 }
 0x72c   :  { %2786 = vrcp.f32 %v651_v28 }
 0x735   :  { %v2785_v29 = vpop.eup %2784 }
 0x736   :  { %v2787_v30 = vpop.eup %2786  ;;  %v757_v31 = vmul.f32 2.0, %v2785_v29  ;;  %v759_v41 = vmul.f32 %v2785_v29, %v3027_v38 }
 0x737   :  { %v654_v32 = vmul.f32 2.0, %v2787_v30  ;;  %v656_v43 = vmul.f32 %v2787_v30, %v3023_v35 }
 0x738   :  { %v2113_v33 = vadd.f32 -1.0, %v757_v31 }
 0x739   :  { %v2110_v34 = vadd.f32 -1.0, %v654_v32 }
 0x73a   :  { %761 = vrot.lane.b32.xlu0 %v2113_v33, %s2889_s4 }
 0x73b   :  { %658 = vrot.lane.b32.xlu1 %v2110_v34, %s2889_s4 }
 0x7ac   :  { %v762_v36 = vpop.permute.xlu0 %761 }
 0x7ad   :  { %v764_v37 = vmul.f32 %v2785_v29, %v762_v36  ;;  %v659_v39 = vpop.permute.xlu1 %658 }
 0x7ae   :  { %v661_v40 = vmul.f32 %v2787_v30, %v659_v39 }
 0x7af   :  { %766 = vrot.lane.b32.xlu0 %v764_v37, %s2890_s7 }
 0x7b0   :  { %663 = vrot.lane.b32.xlu1 %v661_v40, %s2890_s7 }
 0x821   :  { %v767_v42 = vpop.permute.xlu0 %766 }
 0x822   :  { %v3111_v44 = vadd.f32 %v767_v42, %v759_v41  ;;  %v664_v45 = vpop.permute.xlu1 %663 }
 0x823   :  { %v3113_v46 = vadd.f32 %v664_v45, %v656_v43 }
 0x824   :  { %2788 = vtanh.f32 %v3111_v44 }
 0x825   :  { %2790 = vtanh.f32 %v3113_v46 }
 0x82e   :  { %v2789_v47 = vpop.eup %2788 }
 0x82f   :  { %v2791_v49 = vpop.eup %2790  ;;  %772 = vrot.lane.b32.xlu0 %v2789_v47, %s2889_s4 }
 0x830   :  { %669 = vrot.lane.b32.xlu1 %v2791_v49, %s2889_s4 }
 0x8a1   :  { %v773_v50 = vpop.permute.xlu0 %772 }
 0x8a2   :  { %v775_v38 = vmul.f32 %v2785_v29, %v773_v50  ;;  %v670_v52 = vpop.permute.xlu1 %669 }
 0x8a3   :  { %v3119_v54 = vmul.f32 %v2787_v30, %v670_v52 }
 0x8a4   :  { %777 = vrot.lane.b32.xlu1 %v775_v38, %s2890_s7 }
 0x8a5   :  { %780 = vrot.lane.b32.xlu0 %v3119_v54, %s2889_s4 }
 0x916   :  { %v778_v35 = vpop.permute.xlu1 %777 }
 0x917   :  { %v781_v55 = vpop.permute.xlu0 %780  ;;  %2422 = vmatmul.mubr.msk.f32.vlgmr.msra.gmra.mrb[8].mxu1 %vm249_vm1, %v778_v35 }
 0x918   :  { %v783_v57 = vsel %vm249_vm1, %v778_v35, %v781_v55  ;;  %2661 = vmatpush3.bf16.msra.mxu1 %v2970_v51  ;;  %2440 = vmatprep.mubr.msk.f32.mxu1 %vm2887_vm0, %v2888_v21 }
 0x919   :  { %2411 = vmatmul.mubr.msk.f32.vlgmr.msra.gmra.mrb[10].mxu0 %vm115_vm2, %v783_v57  ;;  %2662 = vmatprep.subr.bf16.mxu1 %v2886_v1 }
 0x91a   :  { %2673 = vmatpush3.bf16.msra.mxu0 %v2930_v14  ;;  %2451 = vmatprep.mubr.msk.f32.mxu0 %vm2887_vm0, %v2888_v21 }
 0x91b   :  { %2674 = vmatprep.subr.bf16.mxu0 %v2886_v1 }
 0x91c   :  { %2664 = vmatpush3.bf16.msra.mxu1 %v2973_v53 }
 0x91d   :  { %2665 = vmatprep.subr.bf16.mxu1 %v2886_v1 }
 0x91e   :  { %2676 = vmatpush3.bf16.msra.mxu0 %v2933_v18 }
 0x91f   :  { %2677 = vmatprep.subr.bf16.mxu0 %v2886_v1 }
 0x920   :  { %2667 = vmatpush3.bf16.msra.mxu1 %v2977_v56 }
 0x921   :  { %2668 = vmatprep.subr.bf16.mxu1 %v2886_v1 }
 0x924   :  { %2670 = vmatpush3.bf16.msra.mxu1 %v2982_v60 }
 0x925   :  { %2689 = vmatprep.subr.bf16.mxu1 %v2886_v1 }
 0x9ea   :  { %v955_v58 = vpop.f32.mrb[8].mxu1 }
 0x9eb   :  { %v959_v59 = vadd.f32 %v3094_v25, %v955_v58  ;;  %v2423_v61 = vpop.f32.mrb[9].mxu1 }
 0x9ec   :  { %v853_v62 = vpop.f32.mrb[10].mxu0 }
 0x9ed   :  { %v2118_v63 = vmul.f32 -1.442695, %v959_v59  ;;  %v854_v0 = vadd.f32 %v3011_v4, %v853_v62  ;;  %v2412_v2 = vpop.f32.mrb[11].mxu0 }
 0x9ef   :  { %2792 = vpow2.f32 %v2118_v63  ;;  %v2115_v3 = vmul.f32 -1.442695, %v854_v0 }
 0x9f1   :  { %2794 = vpow2.f32 %v2115_v3 }
 0x9f9   :  { %v2793_v5 = vpop.eup %2792 }
 0x9fa   :  { %v963_v6 = vadd.f32 1.0, %v2793_v5 }
 0x9fb   :  { %v2795_v7 = vpop.eup %2794 }
 0x9fc   :  { %2796 = vrcp.f32 %v963_v6  ;;  %v860_v8 = vadd.f32 1.0, %v2795_v7 }
 0x9fe   :  { %2798 = vrcp.f32 %v860_v8 }
 0xa06   :  { %v2797_v13 = vpop.eup %2796 }
 0xa07   :  { %v966_v15 = vmul.f32 2.0, %v2797_v13  ;;  %v968_v26 = vmul.f32 %v2797_v13, %v3111_v44 }
 0xa08   :  { %v2799_v16 = vpop.eup %2798 }
 0xa09   :  { %v2119_v17 = vadd.f32 -1.0, %v966_v15  ;;  %v863_v25 = vmul.f32 2.0, %v2799_v16  ;;  %v865_v29 = vmul.f32 %v2799_v16, %v3113_v46 }
 0xa0b   :  { %970 = vrot.lane.b32.xlu0 %v2119_v17, %s2889_s4  ;;  %v2116_v19 = vadd.f32 -1.0, %v863_v25 }
 0xa0d   :  { %867 = vrot.lane.b32.xlu1 %v2116_v19, %s2889_s4 }
 0xa7d   :  { %v971_v20 = vpop.permute.xlu0 %970 }
 0xa7e   :  { %v973_v22 = vmul.f32 %v2797_v13, %v971_v20 }
 0xa7f   :  { %v868_v23 = vpop.permute.xlu1 %867 }
 0xa80   :  { %v870_v24 = vmul.f32 %v2799_v16, %v868_v23  ;;  %975 = vrot.lane.b32.xlu0 %v973_v22, %s2890_s7 }
 0xa82   :  { %872 = vrot.lane.b32.xlu1 %v870_v24, %s2890_s7 }
 0xaf2   :  { %v976_v27 = vpop.permute.xlu0 %975 }
 0xaf3   :  { %v3150_v28 = vadd.f32 %v976_v27, %v968_v26 }
 0xaf4   :  { %v873_v30 = vpop.permute.xlu1 %872 }
 0xaf5   :  { %2800 = vtanh.f32 %v3150_v28  ;;  %v3154_v31 = vadd.f32 %v873_v30, %v865_v29 }
 0xaf7   :  { %2802 = vtanh.f32 %v3154_v31 }
 0xaff   :  { %v2801_v32 = vpop.eup %2800 }
 0xb00   :  { %981 = vrot.lane.b32.xlu0 %v2801_v32, %s2889_s4 }
 0xb01   :  { %v2803_v33 = vpop.eup %2802 }
 0xb02   :  { %878 = vrot.lane.b32.xlu1 %v2803_v33, %s2889_s4 }
 0xb72   :  { %v982_v34 = vpop.permute.xlu0 %981 }
 0xb73   :  { %v984_v36 = vmul.f32 %v2797_v13, %v982_v34 }
 0xb74   :  { %v879_v37 = vpop.permute.xlu1 %878 }
 0xb75   :  { %v3159_v39 = vmul.f32 %v2799_v16, %v879_v37  ;;  %986 = vrot.lane.b32.xlu1 %v984_v36, %s2890_s7 }
 0xb77   :  { %989 = vrot.lane.b32.xlu0 %v3159_v39, %s2889_s4 }
 0xbe7   :  { %v987_v40 = vpop.permute.xlu1 %986 }
 0xbe8   :  { %2452 = vmatmul.mubr.msk.f32.vlgmr.msra.gmra.mrb[12].mxu0 %vm249_vm1, %v987_v40 }
 0xbe9   :  { %v990_v41 = vpop.permute.xlu0 %989  ;;  %2679 = vmatpush3.bf16.msra.mxu0 %v2970_v51  ;;  %2470 = vmatprep.mubr.msk.f32.mxu0 %vm2887_vm0, %v2888_v21 }
 0xbea   :  { %v992_v42 = vsel %vm249_vm1, %v987_v40, %v990_v41  ;;  %2680 = vmatprep.subr.bf16.mxu0 %v2886_v1 }
 0xbeb   :  { %2441 = vmatmul.mubr.msk.f32.vlgmr.msra.gmra.mrb[10].mxu1 %vm115_vm2, %v992_v42 }
 0xbec   :  { %2691 = vmatpush3.bf16.msra.mxu1 %v2930_v14  ;;  %2481 = vmatprep.mubr.msk.f32.mxu1 %vm2887_vm0, %v2888_v21 }
 0xbed   :  { %2682 = vmatpush3.bf16.msra.mxu0 %v2973_v53  ;;  %2692 = vmatprep.subr.bf16.mxu1 %v2886_v1 }
 0xbee   :  { %2683 = vmatprep.subr.bf16.mxu0 %v2886_v1 }
 0xbf0   :  { %2694 = vmatpush3.bf16.msra.mxu1 %v2933_v18 }
 0xbf1   :  { %2685 = vmatpush3.bf16.msra.mxu0 %v2977_v56  ;;  %2695 = vmatprep.subr.bf16.mxu1 %v2886_v1 }
 0xbf2   :  { %2686 = vmatprep.subr.bf16.mxu0 %v2886_v1 }
 0xbf5   :  { %2688 = vmatpush3.bf16.msra.mxu0 %v2982_v60 }
 0xbf6   :  { %2707 = vmatprep.subr.bf16.mxu0 %v2886_v1 }
 0xcbb   :  { %v1164_v43 = vpop.f32.mrb[12].mxu0 }
 0xcbc   :  { %v1168_v44 = vadd.f32 %v1164_v43, %v3098_v10  ;;  %v2453_v45 = vpop.f32.mrb[13].mxu0 }
 0xcbe   :  { %v2124_v46 = vmul.f32 -1.442695, %v1168_v44  ;;  %v1062_v47 = vpop.f32.mrb[10].mxu1 }
 0xcbf   :  { %v1063_v49 = vadd.f32 %v3011_v4, %v1062_v47  ;;  %v2442_v50 = vpop.f32.mrb[11].mxu1 }
 0xcc0   :  { %2804 = vpow2.f32 %v2124_v46 }
 0xcc1   :  { %v2121_v38 = vmul.f32 -1.442695, %v1063_v49 }
 0xcc3   :  { %2806 = vpow2.f32 %v2121_v38 }
 0xcca   :  { %v2805_v52 = vpop.eup %2804 }
 0xccb   :  { %v1172_v35 = vadd.f32 1.0, %v2805_v52 }
 0xccd   :  { %v2807_v55 = vpop.eup %2806  ;;  %2808 = vrcp.f32 %v1172_v35 }
 0xcce   :  { %v1069_v57 = vadd.f32 1.0, %v2807_v55 }
 0xcd0   :  { %2810 = vrcp.f32 %v1069_v57 }
 0xcd7   :  { %v2809_v58 = vpop.eup %2808 }
 0xcd8   :  { %v1175_v59 = vmul.f32 2.0, %v2809_v58  ;;  %v1177_v6 = vmul.f32 %v2809_v58, %v3150_v28 }
 0xcda   :  { %v2811_v61 = vpop.eup %2810  ;;  %v2125_v62 = vadd.f32 -1.0, %v1175_v59 }
 0xcdb   :  { %v1072_v10 = vmul.f32 2.0, %v2811_v61  ;;  %v1074_v13 = vmul.f32 %v2811_v61, %v3154_v31 }
 0xcdc   :  { %1179 = vrot.lane.b32.xlu0 %v2125_v62, %s2889_s4 }
 0xcdd   :  { %v2122_v63 = vadd.f32 -1.0, %v1072_v10 }
 0xcdf   :  { %1076 = vrot.lane.b32.xlu1 %v2122_v63, %s2889_s4 }
 0xd4e   :  { %v1180_v0 = vpop.permute.xlu0 %1179 }
 0xd4f   :  { %v1182_v2 = vmul.f32 %v2809_v58, %v1180_v0 }
 0xd51   :  { %1184 = vrot.lane.b32.xlu0 %v1182_v2, %s2890_s7  ;;  %v1077_v3 = vpop.permute.xlu1 %1076 }
 0xd52   :  { %v1079_v5 = vmul.f32 %v2811_v61, %v1077_v3 }
 0xd54   :  { %1081 = vrot.lane.b32.xlu1 %v1079_v5, %s2890_s7 }
 0xdc3   :  { %v1185_v7 = vpop.permute.xlu0 %1184 }
 0xdc4   :  { %v3190_v8 = vadd.f32 %v1185_v7, %v1177_v6 }
 0xdc6   :  { %2812 = vtanh.f32 %v3190_v8  ;;  %v1082_v15 = vpop.permute.xlu1 %1081 }
 0xdc7   :  { %v3194_v16 = vadd.f32 %v1082_v15, %v1074_v13 }
 0xdc9   :  { %2814 = vtanh.f32 %v3194_v16 }
 0xdd0   :  { %v2813_v17 = vpop.eup %2812 }
 0xdd1   :  { %1190 = vrot.lane.b32.xlu0 %v2813_v17, %s2889_s4 }
 0xdd3   :  { %v2815_v25 = vpop.eup %2814 }
 0xdd4   :  { %1087 = vrot.lane.b32.xlu1 %v2815_v25, %s2889_s4 }
 0xe43   :  { %v1191_v19 = vpop.permute.xlu0 %1190 }
 0xe44   :  { %v1193_v20 = vmul.f32 %v2809_v58, %v1191_v19 }
 0xe46   :  { %1195 = vrot.lane.b32.xlu1 %v1193_v20, %s2890_s7  ;;  %v1088_v22 = vpop.permute.xlu1 %1087 }
 0xe47   :  { %v3200_v23 = vmul.f32 %v2811_v61, %v1088_v22 }
 0xe49   :  { %1198 = vrot.lane.b32.xlu0 %v3200_v23, %s2889_s4 }
 0xeb8   :  { %v1196_v24 = vpop.permute.xlu1 %1195 }
 0xeb9   :  { %2482 = vmatmul.mubr.msk.f32.vlgmr.msra.gmra.mrb[12].mxu1 %vm249_vm1, %v1196_v24 }
 0xeba   :  { %2697 = vmatpush3.bf16.msra.mxu1 %v2970_v51  ;;  %2500 = vmatprep.mubr.msk.f32.mxu1 %vm2887_vm0, %v2888_v21 }
 0xebb   :  { %v1199_v26 = vpop.permute.xlu0 %1198  ;;  %2698 = vmatprep.subr.bf16.mxu1 %v2886_v1 }
 0xebc   :  { %v1201_v27 = vsel %vm249_vm1, %v1196_v24, %v1199_v26 }
 0xebd   :  { %2471 = vmatmul.mubr.msk.f32.vlgmr.msra.gmra.mrb[14].mxu0 %vm115_vm2, %v1201_v27 }
 0xebe   :  { %2709 = vmatpush3.bf16.msra.mxu0 %v2930_v14  ;;  %2700 = vmatpush3.bf16.msra.mxu1 %v2973_v53 }
 0xebf   :  { %2710 = vmatprep.subr.bf16.mxu0 %v2886_v1  ;;  %2701 = vmatprep.subr.bf16.mxu1 %v2886_v1 }
 0xec0   :  { %2511 = vmatprep.mubr.msk.f32.mxu0 %vm2887_vm0, %v2888_v21 }
 0xec2   :  { %2712 = vmatpush3.bf16.msra.mxu0 %v2933_v18  ;;  %2703 = vmatpush3.bf16.msra.mxu1 %v2977_v56 }
 0xec3   :  { %2704 = vmatprep.subr.bf16.mxu1 %v2886_v1  ;;  %2713 = vmatprep.subr.bf16.mxu0 %v2886_v1 }
 0xec6   :  { %2706 = vmatpush3.bf16.msra.mxu1 %v2982_v60 }
 0xec7   :  { %2725 = vmatprep.subr.bf16.mxu1 %v2886_v1 }
 0xf8c   :  { %v1373_v28 = vpop.f32.mrb[12].mxu1 }
 0xf8d   :  { %v1377_v29 = vadd.f32 %v3096_v9, %v1373_v28  ;;  %v2483_v30 = vpop.f32.mrb[13].mxu1 }
 0xf8f   :  { %v2130_v31 = vmul.f32 -1.442695, %v1377_v29 }
 0xf90   :  { %v1271_v32 = vpop.f32.mrb[14].mxu0 }
 0xf91   :  { %2816 = vpow2.f32 %v2130_v31  ;;  %v1272_v33 = vadd.f32 %v3011_v4, %v1271_v32  ;;  %v2472_v34 = vpop.f32.mrb[15].mxu0 }
 0xf93   :  { %v2127_v36 = vmul.f32 -1.442695, %v1272_v33 }
 0xf95   :  { %2818 = vpow2.f32 %v2127_v36 }
 0xf9b   :  { %v2817_v37 = vpop.eup %2816 }
 0xf9c   :  { %v1381_v40 = vadd.f32 1.0, %v2817_v37 }
 0xf9e   :  { %2820 = vrcp.f32 %v1381_v40 }
 0xf9f   :  { %v2819_v41 = vpop.eup %2818 }
 0xfa0   :  { %v1278_v42 = vadd.f32 1.0, %v2819_v41 }
 0xfa2   :  { %2822 = vrcp.f32 %v1278_v42 }
 0xfa8   :  { %v2821_v43 = vpop.eup %2820 }
 0xfa9   :  { %v1384_v44 = vmul.f32 2.0, %v2821_v43  ;;  %v1386_v35 = vmul.f32 %v2821_v43, %v3190_v8 }
 0xfab   :  { %v2131_v45 = vadd.f32 -1.0, %v1384_v44 }
 0xfac   :  { %v2823_v46 = vpop.eup %2822 }
 0xfad   :  { %1388 = vrot.lane.b32.xlu0 %v2131_v45, %s2889_s4  ;;  %v1281_v9 = vmul.f32 2.0, %v2823_v46  ;;  %v1283_v58 = vmul.f32 %v2823_v46, %v3194_v16 }
 0xfaf   :  { %v2128_v47 = vadd.f32 -1.0, %v1281_v9 }
 0xfb1   :  { %1285 = vrot.lane.b32.xlu1 %v2128_v47, %s2889_s4 }
0x101f   :  { %v1389_v49 = vpop.permute.xlu0 %1388 }
0x1020   :  { %v1391_v50 = vmul.f32 %v2821_v43, %v1389_v49 }
0x1022   :  { %1393 = vrot.lane.b32.xlu0 %v1391_v50, %s2890_s7 }
0x1023   :  { %v1286_v38 = vpop.permute.xlu1 %1285 }
0x1024   :  { %v1288_v52 = vmul.f32 %v2823_v46, %v1286_v38 }
0x1026   :  { %1290 = vrot.lane.b32.xlu1 %v1288_v52, %s2890_s7 }
0x1094   :  { %v1394_v55 = vpop.permute.xlu0 %1393 }
0x1095   :  { %v3230_v57 = vadd.f32 %v1394_v55, %v1386_v35 }
0x1097   :  { %2824 = vtanh.f32 %v3230_v57 }
0x1098   :  { %v1291_v59 = vpop.permute.xlu1 %1290 }
0x1099   :  { %v3234_v61 = vadd.f32 %v1291_v59, %v1283_v58 }
0x109b   :  { %2826 = vtanh.f32 %v3234_v61 }
0x10a1   :  { %v2825_v62 = vpop.eup %2824 }
0x10a2   :  { %1399 = vrot.lane.b32.xlu0 %v2825_v62, %s2889_s4 }
0x10a5   :  { %v2827_v10 = vpop.eup %2826 }
0x10a6   :  { %1296 = vrot.lane.b32.xlu1 %v2827_v10, %s2889_s4 }
0x1114   :  { %v1400_v63 = vpop.permute.xlu0 %1399 }
0x1115   :  { %v1402_v0 = vmul.f32 %v2821_v43, %v1400_v63 }
0x1117   :  { %1404 = vrot.lane.b32.xlu1 %v1402_v0, %s2890_s7 }
0x1118   :  { %v1297_v2 = vpop.permute.xlu1 %1296 }
0x1119   :  { %v3240_v3 = vmul.f32 %v2823_v46, %v1297_v2 }
0x111b   :  { %1407 = vrot.lane.b32.xlu0 %v3240_v3, %s2889_s4 }
0x1189   :  { %v1405_v5 = vpop.permute.xlu1 %1404 }
0x118a   :  { %2512 = vmatmul.mubr.msk.f32.vlgmr.msra.gmra.mrb[16].mxu0 %vm249_vm1, %v1405_v5 }
0x118b   :  { %2715 = vmatpush3.bf16.msra.mxu0 %v2970_v51  ;;  %2530 = vmatprep.mubr.msk.f32.mxu0 %vm2887_vm0, %v2888_v21 }
0x118c   :  { %2716 = vmatprep.subr.bf16.mxu0 %v2886_v1 }
0x118d   :  { %v1408_v6 = vpop.permute.xlu0 %1407 }
0x118e   :  { %v1410_v7 = vsel %vm249_vm1, %v1405_v5, %v1408_v6 }
0x118f   :  { %2501 = vmatmul.mubr.msk.f32.vlgmr.msra.gmra.mrb[14].mxu1 %vm115_vm2, %v1410_v7  ;;  %2718 = vmatpush3.bf16.msra.mxu0 %v2973_v53 }
0x1190   :  { %2727 = vmatpush3.bf16.msra.mxu1 %v2930_v14  ;;  %2719 = vmatprep.subr.bf16.mxu0 %v2886_v1 }
0x1191   :  { %2728 = vmatprep.subr.bf16.mxu1 %v2886_v1  ;;  %2541 = vmatprep.mubr.msk.f32.mxu1 %vm2887_vm0, %v2888_v21 }
0x1193   :  { %2721 = vmatpush3.bf16.msra.mxu0 %v2977_v56 }
0x1194   :  { %2730 = vmatpush3.bf16.msra.mxu1 %v2933_v18  ;;  %2722 = vmatprep.subr.bf16.mxu0 %v2886_v1 }
0x1195   :  { %2731 = vmatprep.subr.bf16.mxu1 %v2886_v1 }
0x1197   :  { %2724 = vmatpush3.bf16.msra.mxu0 %v2982_v60 }
0x125d   :  { %v1582_v8 = vpop.f32.mrb[16].mxu0 }
0x125e   :  { %v1586_v14 = vadd.f32 %v1582_v8, %v3102_v12  ;;  %v2513_v13 = vpop.f32.mrb[17].mxu0 }
0x1260   :  { %v2136_v15 = vmul.f32 -1.442695, %v1586_v14 }
0x1262   :  { %2828 = vpow2.f32 %v2136_v15  ;;  %v1480_v16 = vpop.f32.mrb[14].mxu1 }
0x1263   :  { %v1481_v17 = vadd.f32 %v3011_v4, %v1480_v16  ;;  %v2502_v25 = vpop.f32.mrb[15].mxu1 }
0x1265   :  { %v2133_v19 = vmul.f32 -1.442695, %v1481_v17 }
0x1267   :  { %2830 = vpow2.f32 %v2133_v19 }
0x126c   :  { %v2829_v20 = vpop.eup %2828 }
0x126d   :  { %v1590_v18 = vadd.f32 1.0, %v2829_v20 }
0x126f   :  { %2832 = vrcp.f32 %v1590_v18 }
0x1271   :  { %v2831_v22 = vpop.eup %2830 }
0x1272   :  { %v1487_v24 = vadd.f32 1.0, %v2831_v22 }
0x1274   :  { %2834 = vrcp.f32 %v1487_v24 }
0x1279   :  { %v2833_v26 = vpop.eup %2832 }
0x127a   :  { %v1593_v27 = vmul.f32 2.0, %v2833_v26  ;;  %v1595_v36 = vmul.f32 %v2833_v26, %v3230_v57 }
0x127c   :  { %v2137_v28 = vadd.f32 -1.0, %v1593_v27 }
0x127e   :  { %v2835_v29 = vpop.eup %2834  ;;  %1597 = vrot.lane.b32.xlu0 %v2137_v28, %s2889_s4 }
0x127f   :  { %v1490_v12 = vmul.f32 2.0, %v2835_v29  ;;  %v1492_v41 = vmul.f32 %v2835_v29, %v3234_v61 }
0x1281   :  { %v2134_v30 = vadd.f32 -1.0, %v1490_v12 }
0x1283   :  { %1494 = vrot.lane.b32.xlu1 %v2134_v30, %s2889_s4 }
0x12f0   :  { %v1598_v31 = vpop.permute.xlu0 %1597 }
0x12f1   :  { %v1600_v32 = vmul.f32 %v2833_v26, %v1598_v31 }
0x12f3   :  { %1602 = vrot.lane.b32.xlu0 %v1600_v32, %s2890_s7 }
0x12f5   :  { %v1495_v33 = vpop.permute.xlu1 %1494 }
0x12f6   :  { %v1497_v34 = vmul.f32 %v2835_v29, %v1495_v33 }
0x12f8   :  { %1499 = vrot.lane.b32.xlu1 %v1497_v34, %s2890_s7 }
0x1365   :  { %v1603_v37 = vpop.permute.xlu0 %1602 }
0x1366   :  { %v1605_v40 = vadd.f32 %v1603_v37, %v1595_v36 }
0x1368   :  { %2836 = vtanh.f32 %v1605_v40 }
0x136a   :  { %v1500_v42 = vpop.permute.xlu1 %1499 }
0x136b   :  { %v1502_v43 = vadd.f32 %v1500_v42, %v1492_v41 }
0x136d   :  { %2838 = vtanh.f32 %v1502_v43 }
0x1372   :  { %v2837_v44 = vpop.eup %2836 }
0x1373   :  { %1608 = vrot.lane.b32.xlu0 %v2837_v44, %s2889_s4 }
0x1377   :  { %v2839_v45 = vpop.eup %2838 }
0x1378   :  { %1505 = vrot.lane.b32.xlu1 %v2839_v45, %s2889_s4  ;;  %v45_v45 = vld [vmem:[#allocation3 + $0xa8] sm:$0xff] }
0x13e5   :  { %v1609_v46 = vpop.permute.xlu0 %1608 }
0x13e6   :  { %v1611_v9 = vmul.f32 %v2833_v26, %v1609_v46  ;;  %v46_v46 = vld [vmem:[#allocation3 + $0xb0] sm:$0xff] }
0x13e8   :  { %1613 = vrot.lane.b32.xlu1 %v1611_v9, %s2890_s7  ;;  %v2743_v9 = vpack.c.bf16 %v46_v46, %v45_v45 }
0x13ea   :  { %v1506_v47 = vpop.permute.xlu1 %1505  ;;  %2744 = vmatprep.subr.bf16.mxu0 %v2743_v9 }
0x13eb   :  { %v3273_v49 = vmul.f32 %v2835_v29, %v1506_v47 }
0x13ed   :  { %1616 = vrot.lane.b32.xlu0 %v3273_v49, %s2889_s4 }
0x145a   :  { %v1614_v50 = vpop.permute.xlu1 %1613 }
0x145b   :  { %2542 = vmatmul.mubr.msk.f32.vlgmr.msra.gmra.mrb[16].mxu1 %vm249_vm1, %v1614_v50 }
0x145c   :  { %2733 = vmatpush3.bf16.msra.mxu1 %v2970_v51  ;;  %2560 = vmatprep.mubr.msk.f32.mxu1 %vm2887_vm0, %v2888_v21 }
0x145d   :  { %2734 = vmatprep.subr.bf16.mxu1 %v2886_v1 }
0x145f   :  { %v1617_v38 = vpop.permute.xlu0 %1616 }
0x1460   :  { %v1619_v52 = vsel %vm249_vm1, %v1614_v50, %v1617_v38  ;;  %2736 = vmatpush3.bf16.msra.mxu1 %v2973_v53  ;;  %v48_v50 = vld [vmem:[#allocation3 + $0xc0] sm:$0xff] }
0x1461   :  { %2531 = vmatmul.mubr.msk.f32.vlgmr.msra.gmra.mrb[18].mxu0 %vm115_vm2, %v1619_v52  ;;  %2737 = vmatprep.subr.bf16.mxu1 %v2886_v1 }
0x1462   :  { %2746 = vmatpush3.bf16.msra.mxu0 %v2743_v9 }
0x1464   :  { %2739 = vmatpush3.bf16.msra.mxu1 %v2977_v56 }
0x1465   :  { %2740 = vmatprep.subr.bf16.mxu1 %v2886_v1 }
0x1468   :  { %2742 = vmatpush3.bf16.msra.mxu1 %v2982_v60 }
0x152e   :  { %v1791_v51 = vpop.f32.mrb[16].mxu1 }
0x152f   :  { %v1795_v21 = vadd.f32 %v3100_v11, %v1791_v51  ;;  %v2543_v35 = vpop.f32.mrb[17].mxu1 }
0x1531   :  { %v2142_v55 = vmul.f32 -1.442695, %v1795_v21 }
0x1533   :  { %2840 = vpow2.f32 %v2142_v55 }
0x1534   :  { %v1689_v57 = vpop.f32.mrb[18].mxu0 }
0x1535   :  { %v1690_v58 = vadd.f32 %v3011_v4, %v1689_v57  ;;  %v2532_v53 = vpop.f32.mrb[19].mxu0 }
0x1537   :  { %v2139_v59 = vmul.f32 -1.442695, %v1690_v58 }
0x1539   :  { %2842 = vpow2.f32 %v2139_v59 }
0x153d   :  { %v2841_v61 = vpop.eup %2840 }
0x153e   :  { %v1799_v62 = vadd.f32 1.0, %v2841_v61 }
0x1540   :  { %2844 = vrcp.f32 %v1799_v62 }
0x1543   :  { %v2843_v56 = vpop.eup %2842 }
0x1544   :  { %v1696_v10 = vadd.f32 1.0, %v2843_v56 }
0x1546   :  { %2846 = vrcp.f32 %v1696_v10 }
0x154a   :  { %v2845_v1 = vpop.eup %2844 }
0x154b   :  { %v1802_v60 = vmul.f32 2.0, %v2845_v1  ;;  %v1804_v14 = vmul.f32 %v2845_v1, %v1605_v40 }
0x154d   :  { %v2143_v63 = vadd.f32 -1.0, %v1802_v60 }
0x154f   :  { %1806 = vrot.lane.b32.xlu0 %v2143_v63, %s2889_s4 }
0x1550   :  { %v2847_v11 = vpop.eup %2846 }
0x1551   :  { %v1699_v0 = vmul.f32 2.0, %v2847_v11  ;;  %v1701_v16 = vmul.f32 %v2847_v11, %v1502_v43 }
0x1553   :  { %v2140_v2 = vadd.f32 -1.0, %v1699_v0 }
0x1555   :  { %1703 = vrot.lane.b32.xlu1 %v2140_v2, %s2889_s4 }
0x15c1   :  { %v1807_v5 = vpop.permute.xlu0 %1806 }
0x15c2   :  { %v1809_v6 = vmul.f32 %v2845_v1, %v1807_v5 }
0x15c4   :  { %1811 = vrot.lane.b32.xlu0 %v1809_v6, %s2890_s7 }
0x15c7   :  { %v1704_v7 = vpop.permute.xlu1 %1703 }
0x15c8   :  { %v1706_v8 = vmul.f32 %v2847_v11, %v1704_v7 }
0x15ca   :  { %1708 = vrot.lane.b32.xlu1 %v1706_v8, %s2890_s7 }
0x1636   :  { %v1812_v13 = vpop.permute.xlu0 %1811 }
0x1637   :  { %v1814_v15 = vadd.f32 %v1812_v13, %v1804_v14 }
0x1639   :  { %2848 = vtanh.f32 %v1814_v15 }
0x163c   :  { %v1709_v17 = vpop.permute.xlu1 %1708 }
0x163d   :  { %v1711_v25 = vadd.f32 %v1709_v17, %v1701_v16 }
0x163f   :  { %2850 = vtanh.f32 %v1711_v25 }
0x1643   :  { %v2849_v19 = vpop.eup %2848 }
0x1644   :  { %1817 = vrot.lane.b32.xlu0 %v2849_v19, %s2889_s4 }
0x1649   :  { %v2851_v20 = vpop.eup %2850 }
0x164a   :  { %1714 = vrot.lane.b32.xlu1 %v2851_v20, %s2889_s4 }
0x16b6   :  { %v1818_v18 = vpop.permute.xlu0 %1817 }
0x16b7   :  { %v1820_v22 = vmul.f32 %v2845_v1, %v1818_v18 }
0x16b9   :  { %1822 = vrot.lane.b32.xlu1 %v1820_v22, %s2890_s7 }
0x16bc   :  { %v1715_v24 = vpop.permute.xlu1 %1714 }
0x16bd   :  { %v1717_v26 = vmul.f32 %v2847_v11, %v1715_v24 }
0x16bf   :  { %1825 = vrot.lane.b32.xlu0 %v1717_v26, %s2889_s4 }
0x172b   :  { %v1823_v27 = vpop.permute.xlu1 %1822 }
0x1731   :  { %v1826_v28 = vpop.permute.xlu0 %1825 }
0x1732   :  { %v1828_v29 = vsel %vm249_vm1, %v1823_v27, %v1826_v28 }
0x1733   :  { %2561 = vmatmul.mubr.msk.f32.vlgmr.msra.gmra.mrb[18].mxu1 %vm115_vm2, %v1828_v29 }
0x1806   :  { %v1898_v12 = vpop.f32.mrb[18].mxu1 }
0x1807   :  { %v1899_v30 = vadd.f32 %v3011_v4, %v1898_v12  ;;  %v2562_v31 = vpop.f32.mrb[19].mxu1 }
0x1809   :  { %v2145_v32 = vmul.f32 -1.442695, %v1899_v30 }
0x180b   :  { %2852 = vpow2.f32 %v2145_v32 }
0x1815   :  { %v2853_v33 = vpop.eup %2852 }
0x1816   :  { %v1905_v34 = vadd.f32 1.0, %v2853_v33 }
0x1818   :  { %2854 = vrcp.f32 %v1905_v34 }
0x1822   :  { %v2855_v36 = vpop.eup %2854 }
0x1823   :  { %v1908_v37 = vmul.f32 2.0, %v2855_v36  ;;  %v1910_v4 = vmul.f32 %v2855_v36, %v1711_v25 }
0x1825   :  { %v2146_v40 = vadd.f32 -1.0, %v1908_v37 }
0x1827   :  { %1912 = vrot.lane.b32.xlu1 %v2146_v40, %s2889_s4 }
0x1899   :  { %v1913_v41 = vpop.permute.xlu1 %1912 }
0x189a   :  { %v1915_v42 = vmul.f32 %v2855_v36, %v1913_v41 }
0x189c   :  { %1917 = vrot.lane.b32.xlu0 %v1915_v42, %s2890_s7 }
0x18a0   :  { %465 = vrot.lane.b32.xlu0 %v3050_v48, %s2890_s7  ;;  %v47_v48 = vld [vmem:[#allocation3 + $0xb8] sm:$0xff] }
0x18a4   :  { %883 = vrot.lane.b32.xlu0 %v3159_v39, %s2890_s7  ;;  %v2747_v39 = vpack.c.bf16 %v48_v50, %v47_v48 }
0x18a6   :  { %2748 = vmatprep.subr.bf16.mxu0 %v2747_v39 }
0x18a7   :  { %2750 = vmatpush3.bf16.msra.mxu0 %v2747_v39 }
0x18a8   :  { %1301 = vrot.lane.b32.xlu0 %v3240_v3, %s2890_s7 }
0x18ac   :  { %1719 = vrot.lane.b32.xlu0 %v1717_v26, %s2890_s7 }
0x190e   :  { %v1918_v43 = vpop.permute.xlu0 %1917 }
0x190f   :  { %v1920_v44 = vadd.f32 %v1918_v43, %v1910_v4 }
0x1911   :  { %2856 = vtanh.f32 %v1920_v44 }
0x1912   :  { %v466_v47 = vpop.permute.xlu0 %465 }
0x1913   :  { %468 = vst.msk [vmem:[#allocation2] sm:$0xff] %vm249_vm1, %v466_v47 }
0x1916   :  { %v884_v38 = vpop.permute.xlu0 %883 }
0x1917   :  { %886 = vst.msk [vmem:[#allocation2 + $0x10] sm:$0xff] %vm249_vm1, %v884_v38 }
0x191a   :  { %v1302_v3 = vpop.permute.xlu0 %1301  ;;  %v1932_v52 = vld [vmem:[#allocation2] sm:$0xff] }
0x191b   :  { %v2857_v51 = vpop.eup %2856  ;;  %1304 = vst.msk [vmem:[#allocation2 + $0x20] sm:$0xff] %vm249_vm1, %v1302_v3  ;;  %2571 = vmatprep.mubr.msk.f32.mxu0 %vm249_vm1, %v1932_v52 }
0x191c   :  { %1923 = vrot.lane.b32.xlu1 %v2857_v51, %s2889_s4 }
0x191e   :  { %v1720_v21 = vpop.permute.xlu0 %1719 }
0x191f   :  { %1722 = vst.msk [vmem:[#allocation2 + $0x30] sm:$0xff] %vm249_vm1, %v1720_v21 }
0x1920   :  { %674 = vrot.lane.b32.xlu1 %v3119_v54, %s2890_s7  ;;  %v1934_v54 = vld [vmem:[#allocation2 + $0x10] sm:$0xff] }
0x1924   :  { %1092 = vrot.lane.b32.xlu1 %v3200_v23, %s2890_s7 }
0x1926   :  { %v1938_v62 = vld [vmem:[#allocation2 + $0x30] sm:$0xff] }
0x1928   :  { %1510 = vrot.lane.b32.xlu1 %v3273_v49, %s2890_s7  ;;  %v1936_v49 = vld [vmem:[#allocation2 + $0x20] sm:$0xff] }
0x198e   :  { %v1924_v35 = vpop.permute.xlu1 %1923 }
0x198f   :  { %v1926_v55 = vmul.f32 %v2855_v36, %v1924_v35 }
0x1991   :  { %1928 = vrot.lane.b32.xlu1 %v1926_v55, %s2890_s7 }
0x1992   :  { %v675_v57 = vpop.permute.xlu1 %674 }
0x1993   :  { %677 = vst.msk [vmem:[#allocation2 + $0x8] sm:$0xff] %vm249_vm1, %v675_v57 }
0x1996   :  { %v1093_v58 = vpop.permute.xlu1 %1092 }
0x1997   :  { %1095 = vst.msk [vmem:[#allocation2 + $0x18] sm:$0xff] %vm249_vm1, %v1093_v58 }
0x199a   :  { %v1511_v53 = vpop.permute.xlu1 %1510  ;;  %v1933_v59 = vld [vmem:[#allocation2 + $0x8] sm:$0xff] }
0x199b   :  { %1513 = vst.msk [vmem:[#allocation2 + $0x28] sm:$0xff] %vm249_vm1, %v1511_v53  ;;  %2572 = vmatmul.mubr.msk.f32.vlgmr.msra.gmra.mrb[20].mxu0 %vm249_vm1, %v1933_v59 }
0x199c   :  { %2574 = vmatprep.mubr.msk.f32.mxu0 %vm249_vm1, %v1934_v54 }
0x199e   :  { %v1935_v23 = vld [vmem:[#allocation2 + $0x18] sm:$0xff] }
0x199f   :  { %2575 = vmatmul.mubr.msk.f32.gmra.mrb[22].mxu0 %vm249_vm1, %v1935_v23 }
0x19a0   :  { %2577 = vmatprep.mubr.msk.f32.mxu0 %vm249_vm1, %v1936_v49 }
0x19a2   :  { %v1937_v61 = vld [vmem:[#allocation2 + $0x28] sm:$0xff] }
0x19a3   :  { %2578 = vmatmul.mubr.msk.f32.gmra.mrb[24].mxu0 %vm249_vm1, %v1937_v61 }
0x19a4   :  { %2580 = vmatprep.mubr.msk.f32.mxu0 %vm249_vm1, %v1938_v62 }
0x1a03   :  { %v1929_v56 = vpop.permute.xlu1 %1928 }
0x1a04   :  { %1931 = vst.msk [vmem:[#allocation2 + $0x38] sm:$0xff] %vm249_vm1, %v1929_v56 }
0x1a0b   :  { %v1939_v10 = vld [vmem:[#allocation2 + $0x38] sm:$0xff] }
0x1a0c   :  { %2581 = vmatmul.mubr.msk.f32.gmra.mrb[26].mxu0 %vm249_vm1, %v1939_v10 }
0x1a6e   :  { %v2573_v1 = vpop.f32.mrb[20].mxu0 }
0x1a6f   :  { %2070 = vst [vmem:[%s3362_s3 + $0x8] sm:$0xff] %v2573_v1  ;;  %v2030_v60 = vpop.f32.mrb[21].mxu0 }
0x1a70   :  { %2069 = vst [vmem:[%s3362_s3] sm:$0xff] %v2030_v60 }
0x1a72   :  { %v2576_v63 = vpop.f32.mrb[22].mxu0 }
0x1a73   :  { %2072 = vst [vmem:[%s3362_s3 + $0x18] sm:$0xff] %v2576_v63  ;;  %v2040_v11 = vpop.f32.mrb[23].mxu0 }
0x1a74   :  { %2071 = vst [vmem:[%s3362_s3 + $0x10] sm:$0xff] %v2040_v11 }
0x1a76   :  { %v2579_v0 = vpop.f32.mrb[24].mxu0 }
0x1a77   :  { %2074 = vst [vmem:[%s3362_s3 + $0x28] sm:$0xff] %v2579_v0  ;;  %v2050_v2 = vpop.f32.mrb[25].mxu0 }
0x1a78   :  { %2073 = vst [vmem:[%s3362_s3 + $0x20] sm:$0xff] %v2050_v2 }
0x1adf   :  { %v2582_v5 = vpop.f32.mrb[26].mxu0 }
0x1ae0   :  { %2076 = vst [vmem:[%s3362_s3 + $0x38] sm:$0xff] %v2582_v5  ;;  %v2060_v6 = vpop.f32.mrb[27].mxu0 }
0x1ae1   :  { %2075 = vst [vmem:[%s3362_s3 + $0x30] sm:$0xff] %v2060_v6 }
0x1ae2   :  { %2081 = vsyncpa [#allocation4], 1 }

</bundles_post_ra>
